<compile_context>
chip_gen: v7x
topology: tpu7x:2x2x1
jax: 0.10.0
libtpu: 0.0.40
codegen_flags: <defaults>
</compile_context>

<pallas_src>
import jax
import jax.numpy as jnp
from jax.experimental import pallas as pl
from jax.experimental.pallas import tpu as pltpu

POOL = 2    # MaxPool1d(kernel_size=2, stride=2)
KSIZE = 3   # Conv1d kernel_size


# ----------------------------- fused Pallas kernel ------------------------------

def _pool_rows(y, s_even, s_odd):
    """MaxPool1d(2,2) over the row (length) axis of a channels-last (Lconv, C) value.

    pooled[p, c] = max(y[2p, c], y[2p+1, c]). The decimation is written as two small
    selection matmuls so the activation never leaves registers (no VMEM scratch,
    no strided sublane access).
    """
    lc = y.shape[0]
    lp = (lc - POOL) // POOL + 1
    se = s_even[0:lp, 0:lc]
    so = s_odd[0:lp, 0:lc]
    return jnp.maximum(jnp.dot(se, y, preferred_element_type=jnp.float32),
                       jnp.dot(so, y, preferred_element_type=jnp.float32))


def fused_cnn1d_kernel(
    x_ref,                              # (1, Lin, 1)   one batch element, channels-last
    w0_ref, ss0_ref,                    # (K, 1, C0), (2, C0)
    w1_ref, ss1_ref,                    # (K*C0, C1), (2, C1)
    w2_ref, ss2_ref,
    w3_ref, ss3_ref,
    w4_ref, ss4_ref,
    fc1w_ref, fc1b_ref,                 # (L4, C4, F), (1, F)
    fc2w_ref, fc2b_ref,                 # (F, F), (1, F)
    fc3w_ref, fc3b_ref,                 # (F, O), (1, O)
    o_ref,                              # (1, 1, O)
):
    f32 = jnp.float32
    lin = x_ref.shape[1]
    k = w0_ref.shape[0]

    # Selection matrices for the in-register maxpool, built once from 2-D iotas and
    # statically sliced per layer (sized for the largest pre-pool length = layer 0).
    max_lc = lin - (k - 1)
    max_lp = (max_lc - POOL) // POOL + 1
    rows = jax.lax.broadcasted_iota(jnp.int32, (max_lp, max_lc), 0)
    cols = jax.lax.broadcasted_iota(jnp.int32, (max_lp, max_lc), 1)
    s_even = (cols == POOL * rows).astype(f32)
    s_odd = (cols == POOL * rows + 1).astype(f32)

    # ---- layer 0: Cin == 1 -> pure VPU broadcast conv (no MXU).
    xc = x_ref[0]                                   # (Lin, 1)
    lc0 = lin - (k - 1)
    acc = xc[0:lc0, :] * w0_ref[0]                  # (Lc,1) * (1,C0) -> (Lc, C0)
    for kk in range(1, k):                          # static unroll over taps
        acc = acc + xc[kk:kk + lc0, :] * w0_ref[kk]
    h = jnp.maximum(acc * ss0_ref[0:1, :] + ss0_ref[1:2, :], 0.0)   # fused BN + ReLU
    h = _pool_rows(h, s_even, s_odd)

    # ---- layers 1..4: im2col folds the K taps into the contraction ->
    # one (Lconv, K*Cin) @ (K*Cin, Cout) MXU matmul per layer.
    def conv_block(h, w_ref, ss_ref):
        l_in = h.shape[0]
        lc = l_in - (k - 1)
        patches = jnp.concatenate([h[kk:kk + lc, :] for kk in range(k)], axis=1)
        y = jnp.dot(patches, w_ref[...], preferred_element_type=f32)
        y = jnp.maximum(y * ss_ref[0:1, :] + ss_ref[1:2, :], 0.0)   # fused BN + ReLU
        return _pool_rows(y, s_even, s_odd)

    h = conv_block(h, w1_ref, ss1_ref)
    h = conv_block(h, w2_ref, ss2_ref)
    h = conv_block(h, w3_ref, ss3_ref)
    h = conv_block(h, w4_ref, ss4_ref)              # (L4, C4) channels-last

    # ---- fc1: torch flattens (C, L); the fc1 weight was pre-permuted to (L4, C4, F),
    # so the flatten is absorbed into a short static loop of dots on the live value.
    o = fc1b_ref[...]                               # (1, F)
    for l in range(h.shape[0]):                     # static, L4 = 2
        o = o + jnp.dot(h[l:l + 1, :], fc1w_ref[l], preferred_element_type=f32)
    # Dropout(p=0.8) is identity at inference.
    o = jnp.dot(o, fc2w_ref[...], preferred_element_type=f32) + fc2b_ref[...]
    o = jnp.dot(o, fc3w_ref[...], preferred_element_type=f32) + fc3b_ref[...]
    o_ref[0] = o                                    # single small (1, out_size) store


# ------------------------------ wrappers / param prep ----------------------------

def fold_params(params, num_layers=5, eps=1e-5):
    """One-time (outside jit) re-layout of torch-style params into kernel-ready form."""
    fp = {}
    for i in range(num_layers):
        w = params[f'conv{i}_w']                           # (Cout, Cin, K) torch layout
        scale = params[f'bn{i}_gamma'] / jnp.sqrt(params[f'bn{i}_var'] + eps)
        shift = (params[f'conv{i}_b'] - params[f'bn{i}_mean']) * scale + params[f'bn{i}_beta']
        fp[f'ss{i}'] = jnp.stack([scale, shift], axis=0)   # (2, Cout)
        w_kco = jnp.transpose(w, (2, 1, 0))                # (K, Cin, Cout)
        if i == 0:
            fp['w0'] = w_kco                               # (K, 1, C0): VPU broadcast form
        else:
            fp[f'w{i}'] = w_kco.reshape(w.shape[2] * w.shape[1], w.shape[0])  # (K*Cin, Cout)
    c_last = params[f'conv{num_layers - 1}_w'].shape[0]
    fc1 = params['fc1_w']                                  # (F, c_last * l_last)
    l_last = fc1.shape[1] // c_last
    # torch flatten order is c*l_last + l; pre-permute so the kernel consumes the
    # channels-last (l, c) activation directly: fc1w3[l, c, :] = fc1[:, c*l_last + l]
    fp['fc1w3'] = jnp.transpose(fc1.reshape(fc1.shape[0], c_last, l_last), (2, 1, 0))
    fp['fc1b'] = params['fc1_b'][None, :]
    fp['fc2wt'] = params['fc2_w'].T
    fp['fc2b'] = params['fc2_b'][None, :]
    fp['fc3wt'] = params['fc3_w'].T
    fp['fc3b'] = params['fc3_b'][None, :]
    return fp


def cnn1d_forward(x, fp):
    """x: (B, len_seq) f32 -> (B, out_size). The whole network is one pallas_call."""
    B, Lin = x.shape
    out_size = fp['fc3wt'].shape[1]
    x3 = x[:, :, None]                                     # (B, Lin, 1) channels-last

    weights = (fp['w0'], fp['ss0'], fp['w1'], fp['ss1'], fp['w2'], fp['ss2'],
               fp['w3'], fp['ss3'], fp['w4'], fp['ss4'],
               fp['fc1w3'], fp['fc1b'], fp['fc2wt'], fp['fc2b'], fp['fc3wt'], fp['fc3b'])

    def _full_spec(a):
        nd = a.ndim
        return pl.BlockSpec(a.shape, lambda b, _nd=nd: (0,) * _nd)

    out3 = pl.pallas_call(
        fused_cnn1d_kernel,
        out_shape=jax.ShapeDtypeStruct((B, 1, out_size), jnp.float32),
        grid=(B,),
        in_specs=[pl.BlockSpec((1, Lin, 1), lambda b: (b, 0, 0))]
                 + [_full_spec(a) for a in weights],
        out_specs=pl.BlockSpec((1, 1, out_size), lambda b: (b, 0, 0)),
        compiler_params=pltpu.CompilerParams(
            # v7x: the two TensorCores each take one batch element; no-op on v5e/v6e.
            dimension_semantics=("parallel",)),
    )(x3, *weights)
    return out3.reshape(B, out_size)


# -------------------------- params / pure-JAX reference ------------------------------

def init_params(key, len_seq, out_size, in_channels, out_channels, kernel_size, fc_size):
    params = {}
    L = len_seq
    for i, (cin, cout) in enumerate(zip(in_channels, out_channels)):
        key, k1, k2, k3, k4, k5, k6 = jax.random.split(key, 7)
        params[f'conv{i}_w'] = 0.2 * jax.random.normal(k1, (cout, cin, kernel_size), jnp.float32)
        params[f'conv{i}_b'] = 0.1 * jax.random.normal(k2, (cout,), jnp.float32)
        params[f'bn{i}_gamma'] = 1.0 + 0.1 * jax.random.normal(k3, (cout,), jnp.float32)
        params[f'bn{i}_beta'] = 0.1 * jax.random.normal(k4, (cout,), jnp.float32)
        params[f'bn{i}_mean'] = 0.1 * jax.random.normal(k5, (cout,), jnp.float32)
        params[f'bn{i}_var'] = jax.random.uniform(k6, (cout,), jnp.float32, 0.5, 1.5)
        L = L - (kernel_size - 1)               # conv, stride=1, padding=0
        L = (L - 2) // 2 + 1                    # maxpool(2)
    flat = out_channels[-1] * L
    key, k1, k2, k3, k4, k5, k6 = jax.random.split(key, 7)
    params['fc1_w'] = 0.1 * jax.random.normal(k1, (fc_size, flat), jnp.float32)
    params['fc1_b'] = 0.1 * jax.random.normal(k2, (fc_size,), jnp.float32)
    params['fc2_w'] = 0.1 * jax.random.normal(k3, (fc_size, fc_size), jnp.float32)
    params['fc2_b'] = 0.1 * jax.random.normal(k4, (fc_size,), jnp.float32)
    params['fc3_w'] = 0.1 * jax.random.normal(k5, (out_size, fc_size), jnp.float32)
    params['fc3_b'] = 0.1 * jax.random.normal(k6, (out_size,), jnp.float32)
    return params


def cnn1d_reference(x, params, num_layers=5, eps=1e-5):
    """Pure-JAX (XLA) reference mirroring the PyTorch forward in eval mode (NCL layout)."""
    h = x[:, None, :]
    for i in range(num_layers):
        w, b = params[f'conv{i}_w'], params[f'conv{i}_b']
        h = jax.lax.conv_general_dilated(h, w, (1,), 'VALID',
                                         dimension_numbers=('NCH', 'OIH', 'NCH'))
        h = h + b[None, :, None]
        g, beta = params[f'bn{i}_gamma'], params[f'bn{i}_beta']
        m, v = params[f'bn{i}_mean'], params[f'bn{i}_var']
        h = (h - m[None, :, None]) / jnp.sqrt(v[None, :, None] + eps) * g[None, :, None] \
            + beta[None, :, None]
        h = jnp.maximum(h, 0.0)
        B_, C_, L_ = h.shape
        Lp = (L_ - 2) // 2 + 1
        h = h[:, :, :2 * Lp].reshape(B_, C_, Lp, 2).max(axis=-1)
    h = h.reshape(h.shape[0], -1)
    h = h @ params['fc1_w'].T + params['fc1_b']
    h = h @ params['fc2_w'].T + params['fc2_b']
    h = h @ params['fc3_w'].T + params['fc3_b']
    return h


# ---------------------------------- main -------------------------------------

if __name__ == "__main__":
    # Small config consistent with the module: 5 conv blocks (k=3, pool=2) => len_seq=128.
    len_seq, out_size, fc_size = 128, 10, 128
    in_channels = [1, 4, 8, 16, 32]
    out_channels = [4, 8, 16, 32, 64]
    batch = 2

    key = jax.random.PRNGKey(0)
    key, xk = jax.random.split(key)
    params = init_params(key, len_seq, out_size, in_channels, out_channels, KSIZE, fc_size)
    x = jax.random.normal(xk, (batch, len_seq), jnp.float32)

    folded = fold_params(params)                 # one-time param re-layout, outside jit
    fwd = jax.jit(lambda inp: cnn1d_forward(inp, folded))
    out = jax.block_until_ready(fwd(x))

    ref = cnn1d_reference(x, params)
    assert out.shape == (batch, out_size), out.shape
    err = jnp.max(jnp.abs(out - ref))
    assert jnp.allclose(out, ref, rtol=2e-3, atol=5e-3), f"max abs err {err}"

    # TODO(synk): training-mode BatchNorm (batch statistics + running-stat updates) and
    # stochastic Dropout are not modeled; eval-mode semantics are implemented.
    print("KERNEL_OK")
</pallas_src>

<mosaic_0001>
module attributes {stable_mosaic.version = 11 : i64} {
  func.func @fused_cnn1d_kernel(%arg0: i32, %arg1: memref<1x128x1xf32, #tpu.memory_space<vmem>>, %arg2: memref<3x1x4xf32, #tpu.memory_space<vmem>>, %arg3: memref<2x4xf32, #tpu.memory_space<vmem>>, %arg4: memref<12x8xf32, #tpu.memory_space<vmem>>, %arg5: memref<2x8xf32, #tpu.memory_space<vmem>>, %arg6: memref<24x16xf32, #tpu.memory_space<vmem>>, %arg7: memref<2x16xf32, #tpu.memory_space<vmem>>, %arg8: memref<48x32xf32, #tpu.memory_space<vmem>>, %arg9: memref<2x32xf32, #tpu.memory_space<vmem>>, %arg10: memref<96x64xf32, #tpu.memory_space<vmem>>, %arg11: memref<2x64xf32, #tpu.memory_space<vmem>>, %arg12: memref<2x64x128xf32, #tpu.memory_space<vmem>>, %arg13: memref<1x128xf32, #tpu.memory_space<vmem>>, %arg14: memref<128x128xf32, #tpu.memory_space<vmem>>, %arg15: memref<1x128xf32, #tpu.memory_space<vmem>>, %arg16: memref<128x10xf32, #tpu.memory_space<vmem>>, %arg17: memref<1x10xf32, #tpu.memory_space<vmem>>, %arg18: memref<1x1x10xf32, #tpu.memory_space<vmem>>) attributes {dimension_semantics = [#tpu.dimension_semantics<parallel>], iteration_bounds = array<i64: 2>, scalar_prefetch = 0 : i64, scratch_operands = 0 : i64, tpu.core_type = #tpu.core_type<tc>, window_params = [{transform_indices = @transform_0, window_bounds = array<i64: 1, 128, 1>}, {pipeline_mode = #tpu.pipeline_mode<synchronous>, transform_indices = @transform_1, window_bounds = array<i64: 3, 1, 4>}, {pipeline_mode = #tpu.pipeline_mode<synchronous>, transform_indices = @transform_2, window_bounds = array<i64: 2, 4>}, {pipeline_mode = #tpu.pipeline_mode<synchronous>, transform_indices = @transform_3, window_bounds = array<i64: 12, 8>}, {pipeline_mode = #tpu.pipeline_mode<synchronous>, transform_indices = @transform_4, window_bounds = array<i64: 2, 8>}, {pipeline_mode = #tpu.pipeline_mode<synchronous>, transform_indices = @transform_5, window_bounds = array<i64: 24, 16>}, {pipeline_mode = #tpu.pipeline_mode<synchronous>, transform_indices = @transform_6, window_bounds = array<i64: 2, 16>}, {pipeline_mode = #tpu.pipeline_mode<synchronous>, transform_indices = @transform_7, window_bounds = array<i64: 48, 32>}, {pipeline_mode = #tpu.pipeline_mode<synchronous>, transform_indices = @transform_8, window_bounds = array<i64: 2, 32>}, {pipeline_mode = #tpu.pipeline_mode<synchronous>, transform_indices = @transform_9, window_bounds = array<i64: 96, 64>}, {pipeline_mode = #tpu.pipeline_mode<synchronous>, transform_indices = @transform_10, window_bounds = array<i64: 2, 64>}, {pipeline_mode = #tpu.pipeline_mode<synchronous>, transform_indices = @transform_11, window_bounds = array<i64: 2, 64, 128>}, {pipeline_mode = #tpu.pipeline_mode<synchronous>, transform_indices = @transform_12, window_bounds = array<i64: 1, 128>}, {pipeline_mode = #tpu.pipeline_mode<synchronous>, transform_indices = @transform_13, window_bounds = array<i64: 128, 128>}, {pipeline_mode = #tpu.pipeline_mode<synchronous>, transform_indices = @transform_14, window_bounds = array<i64: 1, 128>}, {pipeline_mode = #tpu.pipeline_mode<synchronous>, transform_indices = @transform_15, window_bounds = array<i64: 128, 10>}, {pipeline_mode = #tpu.pipeline_mode<synchronous>, transform_indices = @transform_16, window_bounds = array<i64: 1, 10>}, {transform_indices = @transform_17, window_bounds = array<i64: 1, 1, 10>}]} {
    %0 = tpu.iota {dimensions = array<i32: 0>} : vector<63x126xi32>
    %1 = tpu.iota {dimensions = array<i32: 1>} : vector<63x126xi32>
    %c2_i32 = arith.constant 2 : i32
    %2 = vector.broadcast %c2_i32 : i32 to vector<63x126xi32>
    %3 = arith.muli %2, %0 : vector<63x126xi32>
    %4 = arith.cmpi eq, %1, %3 : vector<63x126xi32>
    %5 = arith.extui %4 : vector<63x126xi1> to vector<63x126xi32>
    %6 = arith.sitofp %5 : vector<63x126xi32> to vector<63x126xf32>
    %c2_i32_0 = arith.constant 2 : i32
    %7 = vector.broadcast %c2_i32_0 : i32 to vector<63x126xi32>
    %8 = arith.muli %7, %0 : vector<63x126xi32>
    %c1_i32 = arith.constant 1 : i32
    %9 = vector.broadcast %c1_i32 : i32 to vector<63x126xi32>
    %10 = arith.addi %8, %9 : vector<63x126xi32>
    %11 = arith.cmpi eq, %1, %10 : vector<63x126xi32>
    %12 = arith.extui %11 : vector<63x126xi1> to vector<63x126xi32>
    %13 = arith.sitofp %12 : vector<63x126xi32> to vector<63x126xf32>
    %c0 = arith.constant 0 : index
    %c0_1 = arith.constant 0 : index
    %c0_2 = arith.constant 0 : index
    %14 = vector.load %arg1[%c0, %c0_1, %c0_2] : memref<1x128x1xf32, #tpu.memory_space<vmem>>, vector<1x128x1xf32>
    %15 = vector.shape_cast %14 : vector<1x128x1xf32> to vector<128x1xf32>
    %16 = vector.extract_strided_slice %15 {offsets = [0, 0], sizes = [126, 1], strides = [1, 1]} : vector<128x1xf32> to vector<126x1xf32>
    %c0_3 = arith.constant 0 : index
    %c0_4 = arith.constant 0 : index
    %c0_5 = arith.constant 0 : index
    %17 = vector.load %arg2[%c0_3, %c0_4, %c0_5] : memref<3x1x4xf32, #tpu.memory_space<vmem>>, vector<1x1x4xf32>
    %18 = vector.shape_cast %17 : vector<1x1x4xf32> to vector<1x4xf32>
    %19 = vector.broadcast %16 : vector<126x1xf32> to vector<126x4xf32>
    %20 = vector.broadcast %18 : vector<1x4xf32> to vector<126x4xf32>
    %21 = arith.mulf %19, %20 : vector<126x4xf32>
    %22 = vector.extract_strided_slice %15 {offsets = [1, 0], sizes = [126, 1], strides = [1, 1]} : vector<128x1xf32> to vector<126x1xf32>
    %c1 = arith.constant 1 : index
    %c0_6 = arith.constant 0 : index
    %c0_7 = arith.constant 0 : index
    %23 = vector.load %arg2[%c1, %c0_6, %c0_7] : memref<3x1x4xf32, #tpu.memory_space<vmem>>, vector<1x1x4xf32>
    %24 = vector.shape_cast %23 : vector<1x1x4xf32> to vector<1x4xf32>
    %25 = vector.broadcast %22 : vector<126x1xf32> to vector<126x4xf32>
    %26 = vector.broadcast %24 : vector<1x4xf32> to vector<126x4xf32>
    %27 = arith.mulf %25, %26 : vector<126x4xf32>
    %28 = arith.addf %21, %27 : vector<126x4xf32>
    %29 = vector.extract_strided_slice %15 {offsets = [2, 0], sizes = [126, 1], strides = [1, 1]} : vector<128x1xf32> to vector<126x1xf32>
    %c2 = arith.constant 2 : index
    %c0_8 = arith.constant 0 : index
    %c0_9 = arith.constant 0 : index
    %30 = vector.load %arg2[%c2, %c0_8, %c0_9] : memref<3x1x4xf32, #tpu.memory_space<vmem>>, vector<1x1x4xf32>
    %31 = vector.shape_cast %30 : vector<1x1x4xf32> to vector<1x4xf32>
    %32 = vector.broadcast %29 : vector<126x1xf32> to vector<126x4xf32>
    %33 = vector.broadcast %31 : vector<1x4xf32> to vector<126x4xf32>
    %34 = arith.mulf %32, %33 : vector<126x4xf32>
    %35 = arith.addf %28, %34 : vector<126x4xf32>
    %c0_10 = arith.constant 0 : index
    %c0_11 = arith.constant 0 : index
    %36 = vector.load %arg3[%c0_10, %c0_11] : memref<2x4xf32, #tpu.memory_space<vmem>>, vector<1x4xf32>
    %37 = vector.broadcast %36 : vector<1x4xf32> to vector<126x4xf32>
    %38 = arith.mulf %35, %37 : vector<126x4xf32>
    %c1_12 = arith.constant 1 : index
    %c0_13 = arith.constant 0 : index
    %39 = vector.load %arg3[%c1_12, %c0_13] : memref<2x4xf32, #tpu.memory_space<vmem>>, vector<1x4xf32>
    %40 = vector.broadcast %39 : vector<1x4xf32> to vector<126x4xf32>
    %41 = arith.addf %38, %40 : vector<126x4xf32>
    %cst = arith.constant 0.000000e+00 : f32
    %42 = vector.broadcast %cst : f32 to vector<126x4xf32>
    %43 = arith.maximumf %41, %42 : vector<126x4xf32>
    %cst_14 = arith.constant dense<0.000000e+00> : vector<63x4xf32>
    %44 = tpu.matmul %6, %43, %cst_14 {dimension_numbers = #tpu.dot_dimension_numbers<[1], [0], [0], [1], [0, 0, 1, 1], [], []>} : vector<63x126xf32>, vector<126x4xf32>, vector<63x4xf32> -> vector<63x4xf32>
    %cst_15 = arith.constant dense<0.000000e+00> : vector<63x4xf32>
    %45 = tpu.matmul %13, %43, %cst_15 {dimension_numbers = #tpu.dot_dimension_numbers<[1], [0], [0], [1], [0, 0, 1, 1], [], []>} : vector<63x126xf32>, vector<126x4xf32>, vector<63x4xf32> -> vector<63x4xf32>
    %46 = arith.maximumf %44, %45 : vector<63x4xf32>
    %47 = vector.extract_strided_slice %46 {offsets = [0, 0], sizes = [61, 4], strides = [1, 1]} : vector<63x4xf32> to vector<61x4xf32>
    %48 = vector.extract_strided_slice %46 {offsets = [1, 0], sizes = [61, 4], strides = [1, 1]} : vector<63x4xf32> to vector<61x4xf32>
    %49 = vector.extract_strided_slice %46 {offsets = [2, 0], sizes = [61, 4], strides = [1, 1]} : vector<63x4xf32> to vector<61x4xf32>
    %50 = tpu.concatenate %47, %48, %49 in 1 : vector<61x4xf32>, vector<61x4xf32>, vector<61x4xf32> -> vector<61x12xf32>
    %c0_16 = arith.constant 0 : index
    %c0_17 = arith.constant 0 : index
    %51 = vector.load %arg4[%c0_16, %c0_17] : memref<12x8xf32, #tpu.memory_space<vmem>>, vector<12x8xf32>
    %cst_18 = arith.constant dense<0.000000e+00> : vector<61x8xf32>
    %52 = tpu.matmul %50, %51, %cst_18 {dimension_numbers = #tpu.dot_dimension_numbers<[1], [0], [0], [1], [0, 0, 1, 1], [], []>} : vector<61x12xf32>, vector<12x8xf32>, vector<61x8xf32> -> vector<61x8xf32>
    %c0_19 = arith.constant 0 : index
    %c0_20 = arith.constant 0 : index
    %53 = vector.load %arg5[%c0_19, %c0_20] : memref<2x8xf32, #tpu.memory_space<vmem>>, vector<1x8xf32>
    %54 = vector.broadcast %53 : vector<1x8xf32> to vector<61x8xf32>
    %55 = arith.mulf %52, %54 : vector<61x8xf32>
    %c1_21 = arith.constant 1 : index
    %c0_22 = arith.constant 0 : index
    %56 = vector.load %arg5[%c1_21, %c0_22] : memref<2x8xf32, #tpu.memory_space<vmem>>, vector<1x8xf32>
    %57 = vector.broadcast %56 : vector<1x8xf32> to vector<61x8xf32>
    %58 = arith.addf %55, %57 : vector<61x8xf32>
    %cst_23 = arith.constant 0.000000e+00 : f32
    %59 = vector.broadcast %cst_23 : f32 to vector<61x8xf32>
    %60 = arith.maximumf %58, %59 : vector<61x8xf32>
    %61 = vector.extract_strided_slice %6 {offsets = [0, 0], sizes = [30, 61], strides = [1, 1]} : vector<63x126xf32> to vector<30x61xf32>
    %62 = vector.extract_strided_slice %13 {offsets = [0, 0], sizes = [30, 61], strides = [1, 1]} : vector<63x126xf32> to vector<30x61xf32>
    %cst_24 = arith.constant dense<0.000000e+00> : vector<30x8xf32>
    %63 = tpu.matmul %61, %60, %cst_24 {dimension_numbers = #tpu.dot_dimension_numbers<[1], [0], [0], [1], [0, 0, 1, 1], [], []>} : vector<30x61xf32>, vector<61x8xf32>, vector<30x8xf32> -> vector<30x8xf32>
    %cst_25 = arith.constant dense<0.000000e+00> : vector<30x8xf32>
    %64 = tpu.matmul %62, %60, %cst_25 {dimension_numbers = #tpu.dot_dimension_numbers<[1], [0], [0], [1], [0, 0, 1, 1], [], []>} : vector<30x61xf32>, vector<61x8xf32>, vector<30x8xf32> -> vector<30x8xf32>
    %65 = arith.maximumf %63, %64 : vector<30x8xf32>
    %66 = vector.extract_strided_slice %65 {offsets = [0, 0], sizes = [28, 8], strides = [1, 1]} : vector<30x8xf32> to vector<28x8xf32>
    %67 = vector.extract_strided_slice %65 {offsets = [1, 0], sizes = [28, 8], strides = [1, 1]} : vector<30x8xf32> to vector<28x8xf32>
    %68 = vector.extract_strided_slice %65 {offsets = [2, 0], sizes = [28, 8], strides = [1, 1]} : vector<30x8xf32> to vector<28x8xf32>
    %69 = tpu.concatenate %66, %67, %68 in 1 : vector<28x8xf32>, vector<28x8xf32>, vector<28x8xf32> -> vector<28x24xf32>
    %c0_26 = arith.constant 0 : index
    %c0_27 = arith.constant 0 : index
    %70 = vector.load %arg6[%c0_26, %c0_27] : memref<24x16xf32, #tpu.memory_space<vmem>>, vector<24x16xf32>
    %cst_28 = arith.constant dense<0.000000e+00> : vector<28x16xf32>
    %71 = tpu.matmul %69, %70, %cst_28 {dimension_numbers = #tpu.dot_dimension_numbers<[1], [0], [0], [1], [0, 0, 1, 1], [], []>} : vector<28x24xf32>, vector<24x16xf32>, vector<28x16xf32> -> vector<28x16xf32>
    %c0_29 = arith.constant 0 : index
    %c0_30 = arith.constant 0 : index
    %72 = vector.load %arg7[%c0_29, %c0_30] : memref<2x16xf32, #tpu.memory_space<vmem>>, vector<1x16xf32>
    %73 = vector.broadcast %72 : vector<1x16xf32> to vector<28x16xf32>
    %74 = arith.mulf %71, %73 : vector<28x16xf32>
    %c1_31 = arith.constant 1 : index
    %c0_32 = arith.constant 0 : index
    %75 = vector.load %arg7[%c1_31, %c0_32] : memref<2x16xf32, #tpu.memory_space<vmem>>, vector<1x16xf32>
    %76 = vector.broadcast %75 : vector<1x16xf32> to vector<28x16xf32>
    %77 = arith.addf %74, %76 : vector<28x16xf32>
    %cst_33 = arith.constant 0.000000e+00 : f32
    %78 = vector.broadcast %cst_33 : f32 to vector<28x16xf32>
    %79 = arith.maximumf %77, %78 : vector<28x16xf32>
    %80 = vector.extract_strided_slice %6 {offsets = [0, 0], sizes = [14, 28], strides = [1, 1]} : vector<63x126xf32> to vector<14x28xf32>
    %81 = vector.extract_strided_slice %13 {offsets = [0, 0], sizes = [14, 28], strides = [1, 1]} : vector<63x126xf32> to vector<14x28xf32>
    %cst_34 = arith.constant dense<0.000000e+00> : vector<14x16xf32>
    %82 = tpu.matmul %80, %79, %cst_34 {dimension_numbers = #tpu.dot_dimension_numbers<[1], [0], [0], [1], [0, 0, 1, 1], [], []>} : vector<14x28xf32>, vector<28x16xf32>, vector<14x16xf32> -> vector<14x16xf32>
    %cst_35 = arith.constant dense<0.000000e+00> : vector<14x16xf32>
    %83 = tpu.matmul %81, %79, %cst_35 {dimension_numbers = #tpu.dot_dimension_numbers<[1], [0], [0], [1], [0, 0, 1, 1], [], []>} : vector<14x28xf32>, vector<28x16xf32>, vector<14x16xf32> -> vector<14x16xf32>
    %84 = arith.maximumf %82, %83 : vector<14x16xf32>
    %85 = vector.extract_strided_slice %84 {offsets = [0, 0], sizes = [12, 16], strides = [1, 1]} : vector<14x16xf32> to vector<12x16xf32>
    %86 = vector.extract_strided_slice %84 {offsets = [1, 0], sizes = [12, 16], strides = [1, 1]} : vector<14x16xf32> to vector<12x16xf32>
    %87 = vector.extract_strided_slice %84 {offsets = [2, 0], sizes = [12, 16], strides = [1, 1]} : vector<14x16xf32> to vector<12x16xf32>
    %88 = tpu.concatenate %85, %86, %87 in 1 : vector<12x16xf32>, vector<12x16xf32>, vector<12x16xf32> -> vector<12x48xf32>
    %c0_36 = arith.constant 0 : index
    %c0_37 = arith.constant 0 : index
    %89 = vector.load %arg8[%c0_36, %c0_37] : memref<48x32xf32, #tpu.memory_space<vmem>>, vector<48x32xf32>
    %cst_38 = arith.constant dense<0.000000e+00> : vector<12x32xf32>
    %90 = tpu.matmul %88, %89, %cst_38 {dimension_numbers = #tpu.dot_dimension_numbers<[1], [0], [0], [1], [0, 0, 1, 1], [], []>} : vector<12x48xf32>, vector<48x32xf32>, vector<12x32xf32> -> vector<12x32xf32>
    %c0_39 = arith.constant 0 : index
    %c0_40 = arith.constant 0 : index
    %91 = vector.load %arg9[%c0_39, %c0_40] : memref<2x32xf32, #tpu.memory_space<vmem>>, vector<1x32xf32>
    %92 = vector.broadcast %91 : vector<1x32xf32> to vector<12x32xf32>
    %93 = arith.mulf %90, %92 : vector<12x32xf32>
    %c1_41 = arith.constant 1 : index
    %c0_42 = arith.constant 0 : index
    %94 = vector.load %arg9[%c1_41, %c0_42] : memref<2x32xf32, #tpu.memory_space<vmem>>, vector<1x32xf32>
    %95 = vector.broadcast %94 : vector<1x32xf32> to vector<12x32xf32>
    %96 = arith.addf %93, %95 : vector<12x32xf32>
    %cst_43 = arith.constant 0.000000e+00 : f32
    %97 = vector.broadcast %cst_43 : f32 to vector<12x32xf32>
    %98 = arith.maximumf %96, %97 : vector<12x32xf32>
    %99 = vector.extract_strided_slice %6 {offsets = [0, 0], sizes = [6, 12], strides = [1, 1]} : vector<63x126xf32> to vector<6x12xf32>
    %100 = vector.extract_strided_slice %13 {offsets = [0, 0], sizes = [6, 12], strides = [1, 1]} : vector<63x126xf32> to vector<6x12xf32>
    %cst_44 = arith.constant dense<0.000000e+00> : vector<6x32xf32>
    %101 = tpu.matmul %99, %98, %cst_44 {dimension_numbers = #tpu.dot_dimension_numbers<[1], [0], [0], [1], [0, 0, 1, 1], [], []>} : vector<6x12xf32>, vector<12x32xf32>, vector<6x32xf32> -> vector<6x32xf32>
    %cst_45 = arith.constant dense<0.000000e+00> : vector<6x32xf32>
    %102 = tpu.matmul %100, %98, %cst_45 {dimension_numbers = #tpu.dot_dimension_numbers<[1], [0], [0], [1], [0, 0, 1, 1], [], []>} : vector<6x12xf32>, vector<12x32xf32>, vector<6x32xf32> -> vector<6x32xf32>
    %103 = arith.maximumf %101, %102 : vector<6x32xf32>
    %104 = vector.extract_strided_slice %103 {offsets = [0, 0], sizes = [4, 32], strides = [1, 1]} : vector<6x32xf32> to vector<4x32xf32>
    %105 = vector.extract_strided_slice %103 {offsets = [1, 0], sizes = [4, 32], strides = [1, 1]} : vector<6x32xf32> to vector<4x32xf32>
    %106 = vector.extract_strided_slice %103 {offsets = [2, 0], sizes = [4, 32], strides = [1, 1]} : vector<6x32xf32> to vector<4x32xf32>
    %107 = tpu.concatenate %104, %105, %106 in 1 : vector<4x32xf32>, vector<4x32xf32>, vector<4x32xf32> -> vector<4x96xf32>
    %c0_46 = arith.constant 0 : index
    %c0_47 = arith.constant 0 : index
    %108 = vector.load %arg10[%c0_46, %c0_47] : memref<96x64xf32, #tpu.memory_space<vmem>>, vector<96x64xf32>
    %cst_48 = arith.constant dense<0.000000e+00> : vector<4x64xf32>
    %109 = tpu.matmul %107, %108, %cst_48 {dimension_numbers = #tpu.dot_dimension_numbers<[1], [0], [0], [1], [0, 0, 1, 1], [], []>} : vector<4x96xf32>, vector<96x64xf32>, vector<4x64xf32> -> vector<4x64xf32>
    %c0_49 = arith.constant 0 : index
    %c0_50 = arith.constant 0 : index
    %110 = vector.load %arg11[%c0_49, %c0_50] : memref<2x64xf32, #tpu.memory_space<vmem>>, vector<1x64xf32>
    %111 = vector.broadcast %110 : vector<1x64xf32> to vector<4x64xf32>
    %112 = arith.mulf %109, %111 : vector<4x64xf32>
    %c1_51 = arith.constant 1 : index
    %c0_52 = arith.constant 0 : index
    %113 = vector.load %arg11[%c1_51, %c0_52] : memref<2x64xf32, #tpu.memory_space<vmem>>, vector<1x64xf32>
    %114 = vector.broadcast %113 : vector<1x64xf32> to vector<4x64xf32>
    %115 = arith.addf %112, %114 : vector<4x64xf32>
    %cst_53 = arith.constant 0.000000e+00 : f32
    %116 = vector.broadcast %cst_53 : f32 to vector<4x64xf32>
    %117 = arith.maximumf %115, %116 : vector<4x64xf32>
    %118 = vector.extract_strided_slice %6 {offsets = [0, 0], sizes = [2, 4], strides = [1, 1]} : vector<63x126xf32> to vector<2x4xf32>
    %119 = vector.extract_strided_slice %13 {offsets = [0, 0], sizes = [2, 4], strides = [1, 1]} : vector<63x126xf32> to vector<2x4xf32>
    %cst_54 = arith.constant dense<0.000000e+00> : vector<2x64xf32>
    %120 = tpu.matmul %118, %117, %cst_54 {dimension_numbers = #tpu.dot_dimension_numbers<[1], [0], [0], [1], [0, 0, 1, 1], [], []>} : vector<2x4xf32>, vector<4x64xf32>, vector<2x64xf32> -> vector<2x64xf32>
    %cst_55 = arith.constant dense<0.000000e+00> : vector<2x64xf32>
    %121 = tpu.matmul %119, %117, %cst_55 {dimension_numbers = #tpu.dot_dimension_numbers<[1], [0], [0], [1], [0, 0, 1, 1], [], []>} : vector<2x4xf32>, vector<4x64xf32>, vector<2x64xf32> -> vector<2x64xf32>
    %122 = arith.maximumf %120, %121 : vector<2x64xf32>
    %c0_56 = arith.constant 0 : index
    %c0_57 = arith.constant 0 : index
    %123 = vector.load %arg13[%c0_56, %c0_57] : memref<1x128xf32, #tpu.memory_space<vmem>>, vector<1x128xf32>
    %124 = vector.extract_strided_slice %122 {offsets = [0, 0], sizes = [1, 64], strides = [1, 1]} : vector<2x64xf32> to vector<1x64xf32>
    %c0_58 = arith.constant 0 : index
    %c0_59 = arith.constant 0 : index
    %c0_60 = arith.constant 0 : index
    %125 = vector.load %arg12[%c0_58, %c0_59, %c0_60] : memref<2x64x128xf32, #tpu.memory_space<vmem>>, vector<1x64x128xf32>
    %126 = vector.shape_cast %125 : vector<1x64x128xf32> to vector<64x128xf32>
    %cst_61 = arith.constant dense<0.000000e+00> : vector<1x128xf32>
    %127 = tpu.matmul %124, %126, %cst_61 {dimension_numbers = #tpu.dot_dimension_numbers<[1], [0], [0], [1], [0, 0, 1, 1], [], []>} : vector<1x64xf32>, vector<64x128xf32>, vector<1x128xf32> -> vector<1x128xf32>
    %128 = arith.addf %123, %127 : vector<1x128xf32>
    %129 = vector.extract_strided_slice %122 {offsets = [1, 0], sizes = [1, 64], strides = [1, 1]} : vector<2x64xf32> to vector<1x64xf32>
    %c1_62 = arith.constant 1 : index
    %c0_63 = arith.constant 0 : index
    %c0_64 = arith.constant 0 : index
    %130 = vector.load %arg12[%c1_62, %c0_63, %c0_64] : memref<2x64x128xf32, #tpu.memory_space<vmem>>, vector<1x64x128xf32>
    %131 = vector.shape_cast %130 : vector<1x64x128xf32> to vector<64x128xf32>
    %cst_65 = arith.constant dense<0.000000e+00> : vector<1x128xf32>
    %132 = tpu.matmul %129, %131, %cst_65 {dimension_numbers = #tpu.dot_dimension_numbers<[1], [0], [0], [1], [0, 0, 1, 1], [], []>} : vector<1x64xf32>, vector<64x128xf32>, vector<1x128xf32> -> vector<1x128xf32>
    %133 = arith.addf %128, %132 : vector<1x128xf32>
    %c0_66 = arith.constant 0 : index
    %c0_67 = arith.constant 0 : index
    %134 = vector.load %arg14[%c0_66, %c0_67] : memref<128x128xf32, #tpu.memory_space<vmem>>, vector<128x128xf32>
    %cst_68 = arith.constant dense<0.000000e+00> : vector<1x128xf32>
    %135 = tpu.matmul %133, %134, %cst_68 {dimension_numbers = #tpu.dot_dimension_numbers<[1], [0], [0], [1], [0, 0, 1, 1], [], []>} : vector<1x128xf32>, vector<128x128xf32>, vector<1x128xf32> -> vector<1x128xf32>
    %c0_69 = arith.constant 0 : index
    %c0_70 = arith.constant 0 : index
    %136 = vector.load %arg15[%c0_69, %c0_70] : memref<1x128xf32, #tpu.memory_space<vmem>>, vector<1x128xf32>
    %137 = arith.addf %135, %136 : vector<1x128xf32>
    %c0_71 = arith.constant 0 : index
    %c0_72 = arith.constant 0 : index
    %138 = vector.load %arg16[%c0_71, %c0_72] : memref<128x10xf32, #tpu.memory_space<vmem>>, vector<128x10xf32>
    %cst_73 = arith.constant dense<0.000000e+00> : vector<1x10xf32>
    %139 = tpu.matmul %137, %138, %cst_73 {dimension_numbers = #tpu.dot_dimension_numbers<[1], [0], [0], [1], [0, 0, 1, 1], [], []>} : vector<1x128xf32>, vector<128x10xf32>, vector<1x10xf32> -> vector<1x10xf32>
    %c0_74 = arith.constant 0 : index
    %c0_75 = arith.constant 0 : index
    %140 = vector.load %arg17[%c0_74, %c0_75] : memref<1x10xf32, #tpu.memory_space<vmem>>, vector<1x10xf32>
    %141 = arith.addf %139, %140 : vector<1x10xf32>
    %c0_76 = arith.constant 0 : index
    %c0_77 = arith.constant 0 : index
    %c0_78 = arith.constant 0 : index
    %142 = vector.load %arg18[%c0_76, %c0_77, %c0_78] : memref<1x1x10xf32, #tpu.memory_space<vmem>>, vector<1x1x10xf32>
    %143 = vector.shape_cast %142 : vector<1x1x10xf32> to vector<1x10xf32>
    %144 = vector.shape_cast %141 : vector<1x10xf32> to vector<1x1x10xf32>
    tpu.vector_store %arg18[%c0_76, %c0_77, %c0_78], %144 {strides = array<i32>} : memref<1x1x10xf32, #tpu.memory_space<vmem>>, vector<1x1x10xf32>,
    return
  }
  func.func @transform_0(%arg0: i32) -> (i32, i32, i32) {
    %c0_i32 = arith.constant 0 : i32
    %c0_i32_0 = arith.constant 0 : i32
    %c0_i32_1 = arith.constant 0 : i32
    return %arg0, %c0_i32, %c0_i32_0 : i32, i32, i32
  }
  func.func @transform_1(%arg0: i32) -> (i32, i32, i32) {
    %c0_i32 = arith.constant 0 : i32
    %c0_i32_0 = arith.constant 0 : i32
    %c0_i32_1 = arith.constant 0 : i32
    %c0_i32_2 = arith.constant 0 : i32
    return %c0_i32, %c0_i32_0, %c0_i32_1 : i32, i32, i32
  }
  func.func @transform_2(%arg0: i32) -> (i32, i32) {
    %c0_i32 = arith.constant 0 : i32
    %c0_i32_0 = arith.constant 0 : i32
    %c0_i32_1 = arith.constant 0 : i32
    return %c0_i32, %c0_i32_0 : i32, i32
  }
  func.func @transform_3(%arg0: i32) -> (i32, i32) {
    %c0_i32 = arith.constant 0 : i32
    %c0_i32_0 = arith.constant 0 : i32
    %c0_i32_1 = arith.constant 0 : i32
    return %c0_i32, %c0_i32_0 : i32, i32
  }
  func.func @transform_4(%arg0: i32) -> (i32, i32) {
    %c0_i32 = arith.constant 0 : i32
    %c0_i32_0 = arith.constant 0 : i32
    %c0_i32_1 = arith.constant 0 : i32
    return %c0_i32, %c0_i32_0 : i32, i32
  }
  func.func @transform_5(%arg0: i32) -> (i32, i32) {
    %c0_i32 = arith.constant 0 : i32
    %c0_i32_0 = arith.constant 0 : i32
    %c0_i32_1 = arith.constant 0 : i32
    return %c0_i32, %c0_i32_0 : i32, i32
  }
  func.func @transform_6(%arg0: i32) -> (i32, i32) {
    %c0_i32 = arith.constant 0 : i32
    %c0_i32_0 = arith.constant 0 : i32
    %c0_i32_1 = arith.constant 0 : i32
    return %c0_i32, %c0_i32_0 : i32, i32
  }
  func.func @transform_7(%arg0: i32) -> (i32, i32) {
    %c0_i32 = arith.constant 0 : i32
    %c0_i32_0 = arith.constant 0 : i32
    %c0_i32_1 = arith.constant 0 : i32
    return %c0_i32, %c0_i32_0 : i32, i32
  }
  func.func @transform_8(%arg0: i32) -> (i32, i32) {
    %c0_i32 = arith.constant 0 : i32
    %c0_i32_0 = arith.constant 0 : i32
    %c0_i32_1 = arith.constant 0 : i32
    return %c0_i32, %c0_i32_0 : i32, i32
  }
  func.func @transform_9(%arg0: i32) -> (i32, i32) {
    %c0_i32 = arith.constant 0 : i32
    %c0_i32_0 = arith.constant 0 : i32
    %c0_i32_1 = arith.constant 0 : i32
    return %c0_i32, %c0_i32_0 : i32, i32
  }
  func.func @transform_10(%arg0: i32) -> (i32, i32) {
    %c0_i32 = arith.constant 0 : i32
    %c0_i32_0 = arith.constant 0 : i32
    %c0_i32_1 = arith.constant 0 : i32
    return %c0_i32, %c0_i32_0 : i32, i32
  }
  func.func @transform_11(%arg0: i32) -> (i32, i32, i32) {
    %c0_i32 = arith.constant 0 : i32
    %c0_i32_0 = arith.constant 0 : i32
    %c0_i32_1 = arith.constant 0 : i32
    %c0_i32_2 = arith.constant 0 : i32
    return %c0_i32, %c0_i32_0, %c0_i32_1 : i32, i32, i32
  }
  func.func @transform_12(%arg0: i32) -> (i32, i32) {
    %c0_i32 = arith.constant 0 : i32
    %c0_i32_0 = arith.constant 0 : i32
    %c0_i32_1 = arith.constant 0 : i32
    return %c0_i32, %c0_i32_0 : i32, i32
  }
  func.func @transform_13(%arg0: i32) -> (i32, i32) {
    %c0_i32 = arith.constant 0 : i32
    %c0_i32_0 = arith.constant 0 : i32
    %c0_i32_1 = arith.constant 0 : i32
    return %c0_i32, %c0_i32_0 : i32, i32
  }
  func.func @transform_14(%arg0: i32) -> (i32, i32) {
    %c0_i32 = arith.constant 0 : i32
    %c0_i32_0 = arith.constant 0 : i32
    %c0_i32_1 = arith.constant 0 : i32
    return %c0_i32, %c0_i32_0 : i32, i32
  }
  func.func @transform_15(%arg0: i32) -> (i32, i32) {
    %c0_i32 = arith.constant 0 : i32
    %c0_i32_0 = arith.constant 0 : i32
    %c0_i32_1 = arith.constant 0 : i32
    return %c0_i32, %c0_i32_0 : i32, i32
  }
  func.func @transform_16(%arg0: i32) -> (i32, i32) {
    %c0_i32 = arith.constant 0 : i32
    %c0_i32_0 = arith.constant 0 : i32
    %c0_i32_1 = arith.constant 0 : i32
    return %c0_i32, %c0_i32_0 : i32, i32
  }
  func.func @transform_17(%arg0: i32) -> (i32, i32, i32) {
    %c0_i32 = arith.constant 0 : i32
    %c0_i32_0 = arith.constant 0 : i32
    %c0_i32_1 = arith.constant 0 : i32
    return %arg0, %c0_i32, %c0_i32_0 : i32, i32, i32
  }
}

</mosaic_0001>

<bundles_post_ra>
// kernel: _lambda_.1
= control target key start
LH: loop header
LB: loop body
LE: loop exit
PB: predicated region body
PF: predicated region fallthrough
CT: control target
= control target key end

     0   :  { %s5670_s0 = inlined_call_operand.vmem [shape: f32[2,128,1], index: 0, kind: input, shape index: {}]   ;;  %s5671_s1 = inlined_call_operand.hbm [shape: f32[3,1,4], index: 1, kind: input, shape index: {}]   ;;  %s5672_s2 = inlined_call_operand.hbm [shape: f32[2,4], index: 2, kind: input, shape index: {}]   ;;  %s5673_s3 = inlined_call_operand.hbm [shape: f32[12,8], index: 3, kind: input, shape index: {}]   ;;  %s5674_s4 = inlined_call_operand.hbm [shape: f32[2,8], index: 4, kind: input, shape index: {}]   ;;  %s5675_s5 = inlined_call_operand.vmem [shape: f32[24,16], index: 5, kind: input, shape index: {}]   ;;  %s5676_s6 = inlined_call_operand.hbm [shape: f32[2,16], index: 6, kind: input, shape index: {}]   ;;  %s5677_s7 = inlined_call_operand.hbm [shape: f32[48,32], index: 7, kind: input, shape index: {}]   ;;  %s5678_s8 = inlined_call_operand.vmem [shape: f32[2,32], index: 8, kind: input, shape index: {}]   ;;  %s5679_s9 = inlined_call_operand.hbm [shape: f32[96,64], index: 9, kind: input, shape index: {}]   ;;  %s5680_s10 = inlined_call_operand.vmem [shape: f32[2,64], index: 10, kind: input, shape index: {}]   ;;  %s5681_s11 = inlined_call_operand.hbm [shape: f32[2,64,128], index: 11, kind: input, shape index: {}]   ;;  %s5682_s12 = inlined_call_operand.vmem [shape: f32[1,128], index: 12, kind: input, shape index: {}]   ;;  %s5683_s13 = inlined_call_operand.vmem [shape: f32[128,128], index: 13, kind: input, shape index: {}]   ;;  %s5684_s14 = inlined_call_operand.vmem [shape: f32[1,128], index: 14, kind: input, shape index: {}]   ;;  %s5685_s15 = inlined_call_operand.vmem [shape: f32[128,10], index: 15, kind: input, shape index: {}]   ;;  %s5686_s16 = inlined_call_operand.vmem [shape: f32[1,10], index: 16, kind: input, shape index: {}]   ;;  %s5687_s17 = inlined_call_operand.hbm [shape: f32[2,1,10], index: 17, kind: output, shape index: {}]  }
   0x1   :  { %5706 = sst [smem:[#allocation30_spill]] %s5670_s0 }
   0x2   :  { %5707 = sst [smem:[#allocation31_spill]] %s5671_s1 }
   0x3   :  { %5708 = sst [smem:[#allocation32_spill]] %s5672_s2 }
   0x4   :  { %5709 = sst [smem:[#allocation33_spill]] %s5674_s4 }
   0x5   :  { %5710 = sst [smem:[#allocation34_spill]] %s5684_s14 }
   0x6   :  { %5711 = sst [smem:[#allocation35_spill]] %s5686_s16 }
   0x7   :  { %5712 = sst [smem:[#allocation36_spill]] %s5687_s17 }
   0x8   :  { %22 = vsyncpa [#allocation3], 0 }
   0x9   :  { %23 = vsyncpa [#allocation6], 0 }
   0xa   :  { %24 = vsyncpa [#allocation9], 0 }
   0xb   :  { %25 = vsyncpa [#allocation12], 0 }
   0xc   :  { %26 = vsyncpa [#allocation15], 0 }
   0xd   :  { %27 = vsyncpa [#allocation4], 0 }
   0xe   :  { %29 = vsyncpa [#allocation4 + $0x1], 0  ;;  %s4678_s24 = smov 0   ;;  %s4680_s25 = smov 0  }
   0xf   :  { %s4682_s26 = smov 0   ;;  %s4684_s27 = smov 0  }
  0x10 LB: > { %5713 = sst [smem:[#allocation23_spill]] %s4551_s24  ;;  %s4699_s28 = sadd.s32 4294967295, %s4563_s27   ;;  %s4563_s27 = sphi %s4684_s27, %s5780_s27   ;;  %s4559_s26 = sphi %s4682_s26, %s5782_s26   ;;  %s4555_s25 = sphi %s4680_s25, %s5784_s25   ;;  %s4551_s24 = sphi %s4678_s24, %s5783_s24  }
  0x11   : > { %5714 = sst [smem:[#allocation24_spill]] %s4559_s26  ;;  %s3219_s29 = sadd.s32 4294967294, %s4563_s27  }
  0x12   : > { %5715 = sst [smem:[#allocation25_spill]] %s4563_s27  ;;  %s4703_s0 = sadd.s32 1, %s4563_s27  }
  0x13   : > { %5716 = sst [smem:[#allocation26_spill]] %s4703_s0  ;;  %s404_s30 = sadd.s32 1, %s4559_s26 }
  0x14   : > { %s401_s18 = ssub.s32 %s4563_s27, %s4703_s0  ;;  %p414_p0 = scmp.ne.s32.totalorder %s4559_s26, %s4555_s25 }
  0x15   : > { %p402_p1 = scmp.eq.s32.totalorder %s401_s18, 0  ;;  %p415_p2 = scmp.eq.s32.totalorder %s4699_s28, 1 }
  0x16   : > { %p420_p3 = scmp.ne.s32.totalorder %s4555_s25, %s4551_s24  ;;  %p421_p4 = scmp.eq.s32.totalorder %s3219_s29, 1 }
  0x17   : > { %s4714_s19 = scalar_select %p402_p1, %s4559_s26, %s404_s30  }
  0x18   : > { %p4716_p5 = por %p415_p2, %p414_p0  ;;  %p4720_p6 = por %p421_p4, %p420_p3 }
  0x19   : > { %5717 = sst [smem:[#allocation27_spill]] %s4714_s19  ;;  %p3220_p7 = scmp.ge.s32.totalorder %s4563_s27, 1 }
  0x1a   : > { %s5718_s1 = scalar_select %p4716_p5, 1, 0 }
  0x1b   : > { %s5720_s20 = scalar_select %p4720_p6, 1, 0 }
  0x1c   : > { %5719 = sst [smem:[#allocation28_spill]] %s5718_s1  ;;  %p428_p8 = scmp.lt.s32.totalorder %s4563_s27, 3 }
  0x1d   : > { %5721 = sst [smem:[#allocation29_spill]] %s5720_s20  ;;  %p5696_p9 = scmp.eq.s32.totalorder %s4699_s28, 0 }
  0x1e   : > { %p4727_p10 = pnand %p3220_p7, %p428_p8  ;;  %s4565_s22 = smov [#allocation5]  }
  0x1f   : > { %s454_s23 = sshll.u32 %s4565_s22, 4  ;;  %s4566_s29 = smov [#allocation8]   ;;  %s455_s23 = int_to_ptr.vmem [resolvable:$true] %s454_s23 }
  0x20   : > { %s5722_s21 = scalar_select %p4727_p10, 1, 0 }
  0x21   : > { %p4155_p11 = pneg %p4727_p10  ;;  %s478_s30 = sshll.u32 %s4566_s29, 4  ;;  %s4739_s30 = int_to_ptr.vmem [resolvable:$true] %s478_s30 }
  0x22   : > { %s4567_s19 = smov [#allocation11]   ;;  %s5724_s2 = sld [smem:[#allocation32_spill]] }
  0x23   : > { %p4735_p12 = pnand %p5696_p9, %p4155_p11  ;;  %s4741_s26 = sshll.u32 %s4567_s19, 4  ;;  %s503_s26 = int_to_ptr.vmem [resolvable:$true] %s4741_s26 }
  0x25   : > { %p4751_p0 = pneg %p4735_p12 }
  0x28   : > { %s4257_s22 = scalar_lea.hbm %s5724_s2, 32 }
  0x29   : > { %p4258_p13 = scmp.ne.s32.totalorder %s5724_s2, %s4257_s22  ;;  %p4264_p3 = scmp.lt.u32.totalorder %s4257_s22, %s5724_s2 }
  0x2b   : > { %p4260_p1 = pnand %p4751_p0, %p4258_p13 }
  0x2d   : > { %p4261_p2 = pneg %p4260_p1 }
  0x2f   : > { %p4266_p4 = pnand %p4264_p3, %p4261_p2 }
  0x31   : > { %4269 = shalt.err (!%p4266_p4)
}
  0x32   : > { %s4270_s0 = scalar_lea.vmem %s455_s23, 32  ;;  %p4278_p9 = scmp.lt.s32.totalorder %s455_s23, %s455_s23 }
  0x33   : > { %p4271_p7 = scmp.ne.s32.totalorder %s455_s23, %s4270_s0  ;;  %p4279_p6 = scmp.lt.s32.totalorder %s4270_s0, %s4270_s0 }
  0x35   : > { %p4273_p8 = pnand %p4271_p7, %p4751_p0  ;;  %p4280_p5 = por %p4279_p6, %p4278_p9 }
  0x37   : > { %p4274_p11 = pneg %p4273_p8 }
  0x39   : > { %p4281_p10 = pnand %p4280_p5, %p4274_p11 }
  0x3b   : > { %4284 = shalt.err (!%p4281_p10)
}
  0x3c   : > { %4161 = dma.hbm_to_vmem [thread:$0]  (!%p4735_p12), %s5724_s2, 32, %s455_s23, [#allocation6]  }
  0x3d   : > { %s5726_s4 = sld [smem:[#allocation33_spill]] }
  0x43   : > { %s4285_s22 = scalar_lea.hbm %s5726_s4, 32 }
  0x44   : > { %p4286_p13 = scmp.ne.s32.totalorder %s5726_s4, %s4285_s22  ;;  %p4292_p5 = scmp.lt.u32.totalorder %s4285_s22, %s5726_s4 }
  0x46   : > { %p4288_p1 = pnand %p4286_p13, %p4751_p0 }
  0x48   : > { %p4289_p6 = pneg %p4288_p1 }
  0x4a   : > { %p4294_p9 = pnand %p4292_p5, %p4289_p6 }
  0x4c   : > { %4297 = shalt.err (!%p4294_p9)
}
  0x4d   : > { %s4298_s23 = scalar_lea.vmem %s4739_s30, 32  ;;  %p4306_p4 = scmp.lt.s32.totalorder %s4739_s30, %s4739_s30 }
  0x4e   : > { %p4299_p10 = scmp.ne.s32.totalorder %s4739_s30, %s4298_s23  ;;  %p4307_p7 = scmp.lt.s32.totalorder %s4298_s23, %s4298_s23 }
  0x50   : > { %p4301_p2 = pnand %p4299_p10, %p4751_p0  ;;  %p4308_p8 = por %p4307_p7, %p4306_p4 }
  0x52   : > { %p4302_p3 = pneg %p4301_p2 }
  0x54   : > { %p4309_p11 = pnand %p4308_p8, %p4302_p3 }
  0x56   : > { %4312 = shalt.err (!%p4309_p11)
}
  0x57   : > { %4167 = dma.hbm_to_vmem [thread:$0]  (!%p4735_p12), %s5726_s4, 32, %s4739_s30, [#allocation9]  }
  0x58   : > { %s4313_s17 = scalar_lea.hbm %s5677_s7, 768 }
  0x59   : > { %p4314_p13 = scmp.ne.s32.totalorder %s5677_s7, %s4313_s17  ;;  %p4320_p5 = scmp.lt.u32.totalorder %s4313_s17, %s5677_s7 }
  0x5b   : > { %p4316_p1 = pnand %p4314_p13, %p4751_p0 }
  0x5d   : > { %p4317_p6 = pneg %p4316_p1 }
  0x5f   : > { %p4322_p9 = pnand %p4320_p5, %p4317_p6 }
  0x61   : > { %4325 = shalt.err (!%p4322_p9)
}
  0x62   : > { %s4326_s23 = scalar_lea.vmem %s503_s26, 768  ;;  %p4334_p4 = scmp.lt.s32.totalorder %s503_s26, %s503_s26 }
  0x63   : > { %p4327_p10 = scmp.ne.s32.totalorder %s503_s26, %s4326_s23  ;;  %p4335_p7 = scmp.lt.s32.totalorder %s4326_s23, %s4326_s23 }
  0x65   : > { %p4329_p2 = pnand %p4327_p10, %p4751_p0  ;;  %p4336_p8 = por %p4335_p7, %p4334_p4 }
  0x67   : > { %p4330_p3 = pneg %p4329_p2 }
  0x69   : > { %p4337_p11 = pnand %p4336_p8, %p4330_p3 }
  0x6b   : > { %4340 = shalt.err (!%p4337_p11)
}
  0x6c   : > { %s5701_s30 = smov 128   ;;  %s5703_s16 = smov 8  }
  0x6d   : > { %4173 = dma.hbm_to_vmem [thread:$0]  (!%p4735_p12), %s5677_s7, 768, %s503_s26, [#allocation12], %s5701_s30, %s5701_s30, %s5703_s16  }
  0x6e   : > { %s4570_s27 = smov [#allocation2]   ;;  %s5727_s19 = sld [smem:[#allocation31_spill]] }
  0x6f   : > { %s440_s17 = sshll.u32 %s4570_s27, 4  ;;  %s441_s17 = int_to_ptr.vmem [resolvable:$true] %s440_s17 }
  0x74   : > { %s4341_s0 = scalar_lea.hbm %s5727_s19, 48 }
  0x75   : > { %p4342_p13 = scmp.ne.s32.totalorder %s5727_s19, %s4341_s0  ;;  %p4348_p5 = scmp.lt.u32.totalorder %s4341_s0, %s5727_s19 }
  0x77   : > { %p4344_p1 = pnand %p4342_p13, %p4751_p0 }
  0x79   : > { %p4345_p6 = pneg %p4344_p1 }
  0x7b   : > { %p4350_p9 = pnand %p4348_p5, %p4345_p6 }
  0x7d   : > { %4353 = shalt.err (!%p4350_p9)
}
  0x7e   : > { %s4354_s26 = scalar_lea.vmem %s441_s17, 48  ;;  %s4361_s1 = scalar_lea.vmem %s441_s17, 64 }
  0x7f   : > { %p4355_p10 = scmp.ne.s32.totalorder %s441_s17, %s4354_s26  ;;  %p4362_p4 = scmp.lt.s32.totalorder %s441_s17, %s441_s17 }
  0x80   : > { %p4363_p7 = scmp.lt.s32.totalorder %s4361_s1, %s4354_s26 }
  0x81   : > { %p4357_p2 = pnand %p4355_p10, %p4751_p0 }
  0x82   : > { %p4364_p8 = por %p4363_p7, %p4362_p4 }
  0x83   : > { %p4358_p3 = pneg %p4357_p2 }
  0x85   : > { %p4365_p11 = pnand %p4364_p8, %p4358_p3 }
  0x87   : > { %4368 = shalt.err (!%p4365_p11)
}
  0x88   : > { %s4571_s2 = smov 16   ;;  %s4572_s24 = smov 1  }
  0x89   : > { %4158 = dma.hbm_to_vmem [thread:$0]  (!%p4735_p12), %s5727_s19, 48, %s441_s17, [#allocation3], %s4571_s2, %s4571_s2, %s4572_s24  }
  0x8a   : > { %s4573_s27 = smov [#allocation7]   ;;  %s4574_s22 = smov [#allocation10]  }
  0x8b   : > { %s464_s20 = sshll.u32 %s4573_s27, 4  ;;  %s492_s0 = sshll.u32 %s4574_s22, 4  ;;  %s465_s20 = int_to_ptr.vmem [resolvable:$true] %s464_s20  ;;  %s4830_s0 = int_to_ptr.vmem [resolvable:$true] %s492_s0 }
  0x8c   : > { %s4369_s1 = scalar_lea.hbm %s5673_s3, 256 }
  0x8d   : > { %p4370_p13 = scmp.ne.s32.totalorder %s5673_s3, %s4369_s1  ;;  %p4376_p5 = scmp.lt.u32.totalorder %s4369_s1, %s5673_s3 }
  0x8f   : > { %p4372_p1 = pnand %p4370_p13, %p4751_p0 }
  0x91   : > { %p4373_p6 = pneg %p4372_p1 }
  0x93   : > { %p4378_p9 = pnand %p4376_p5, %p4373_p6 }
  0x95   : > { %4381 = shalt.err (!%p4378_p9)
}
  0x96   : > { %s4382_s2 = scalar_lea.vmem %s465_s20, 256  ;;  %p4390_p4 = scmp.lt.s32.totalorder %s465_s20, %s465_s20 }
  0x97   : > { %p4383_p10 = scmp.ne.s32.totalorder %s465_s20, %s4382_s2  ;;  %p4391_p7 = scmp.lt.s32.totalorder %s4382_s2, %s4382_s2 }
  0x99   : > { %p4385_p2 = pnand %p4383_p10, %p4751_p0  ;;  %p4392_p8 = por %p4391_p7, %p4390_p4 }
  0x9b   : > { %p4386_p3 = pneg %p4385_p2 }
  0x9d   : > { %p4393_p11 = pnand %p4392_p8, %p4386_p3 }
  0x9f   : > { %4396 = shalt.err (!%p4393_p11)
}
  0xa0   : > { %s5728_s30 = smov 8   ;;  %s5729_s16 = smov 128  }
  0xa1   : > { %4164 = dma.hbm_to_vmem [thread:$0]  (!%p4735_p12), %s5673_s3, 256, %s465_s20, [#allocation6], %s5729_s16, %s5729_s16, %s5728_s30  }
  0xa2   : > { %s4397_s23 = scalar_lea.hbm %s5676_s6, 32 }
  0xa3   : > { %p4398_p13 = scmp.ne.s32.totalorder %s5676_s6, %s4397_s23  ;;  %p4404_p5 = scmp.lt.u32.totalorder %s4397_s23, %s5676_s6 }
  0xa5   : > { %p4400_p1 = pnand %p4398_p13, %p4751_p0 }
  0xa7   : > { %p4401_p6 = pneg %p4400_p1 }
  0xa9   : > { %p4406_p9 = pnand %p4404_p5, %p4401_p6 }
  0xab   : > { %4409 = shalt.err (!%p4406_p9)
}
  0xac   : > { %s4410_s20 = scalar_lea.vmem %s4830_s0, 32  ;;  %p4418_p4 = scmp.lt.s32.totalorder %s4830_s0, %s4830_s0 }
  0xad   : > { %p4411_p10 = scmp.ne.s32.totalorder %s4830_s0, %s4410_s20  ;;  %p4419_p7 = scmp.lt.s32.totalorder %s4410_s20, %s4410_s20 }
  0xaf   : > { %p4413_p2 = pnand %p4411_p10, %p4751_p0  ;;  %p4420_p8 = por %p4419_p7, %p4418_p4 }
  0xb1   : > { %p4414_p3 = pneg %p4413_p2 }
  0xb3   : > { %p4421_p11 = pnand %p4420_p8, %p4414_p3 }
  0xb5   : > { %4424 = shalt.err (!%p4421_p11)
}
  0xb6   : > { %4170 = dma.hbm_to_vmem [thread:$0]  (!%p4735_p12), %s5676_s6, 32, %s4830_s0, [#allocation9]  }
  0xb7   : > { %s4575_s14 = smov [#allocation13]   ;;  %s4576_s22 = smov [#allocation14]  }
  0xb8   : > { %s518_s27 = sshll.u32 %s4575_s14, 4  ;;  %s534_s23 = sshll.u32 %s4576_s22, 4  ;;  %s519_s27 = int_to_ptr.vmem [resolvable:$true] %s518_s27  ;;  %s4876_s23 = int_to_ptr.vmem [resolvable:$true] %s534_s23 }
  0xb9   : > { %s4425_s4 = scalar_lea.hbm %s5679_s9, 1536 }
  0xba   : > { %p4426_p13 = scmp.ne.s32.totalorder %s5679_s9, %s4425_s4  ;;  %p4432_p5 = scmp.lt.u32.totalorder %s4425_s4, %s5679_s9 }
  0xbc   : > { %p4428_p1 = pnand %p4426_p13, %p4751_p0 }
  0xbe   : > { %p4429_p6 = pneg %p4428_p1 }
  0xc0   : > { %p4434_p9 = pnand %p4432_p5, %p4429_p6 }
  0xc2   : > { %4437 = shalt.err (!%p4434_p9)
}
  0xc3   : > { %s4438_s24 = scalar_lea.vmem %s519_s27, 1536  ;;  %p4446_p4 = scmp.lt.s32.totalorder %s519_s27, %s519_s27 }
  0xc4   : > { %p4439_p10 = scmp.ne.s32.totalorder %s519_s27, %s4438_s24  ;;  %p4447_p7 = scmp.lt.s32.totalorder %s4438_s24, %s4438_s24 }
  0xc6   : > { %p4441_p2 = pnand %p4439_p10, %p4751_p0  ;;  %p4448_p8 = por %p4447_p7, %p4446_p4 }
  0xc8   : > { %p4442_p3 = pneg %p4441_p2 }
  0xca   : > { %p4449_p11 = pnand %p4448_p8, %p4442_p3 }
  0xcc   : > { %4452 = shalt.err (!%p4449_p11)
}
  0xcd   : > { %4176 = dma.hbm_to_vmem [thread:$0]  (!%p4735_p12), %s5679_s9, 1536, %s519_s27, [#allocation12], %s5729_s16, %s5729_s16, %s5728_s30  }
  0xce   : > { %s4453_s4 = scalar_lea.hbm %s5681_s11, 2048 }
  0xcf   : > { %p4454_p13 = scmp.ne.s32.totalorder %s5681_s11, %s4453_s4  ;;  %p4460_p5 = scmp.lt.u32.totalorder %s4453_s4, %s5681_s11 }
  0xd1   : > { %p4456_p1 = pnand %p4454_p13, %p4751_p0 }
  0xd3   : > { %p4457_p6 = pneg %p4456_p1 }
  0xd5   : > { %p4462_p9 = pnand %p4460_p5, %p4457_p6 }
  0xd7   : > { %4465 = shalt.err (!%p4462_p9)
}
  0xd8   : > { %s4466_s27 = scalar_lea.vmem %s4876_s23, 2048  ;;  %p4474_p4 = scmp.lt.s32.totalorder %s4876_s23, %s4876_s23 }
  0xd9   : > { %p4467_p10 = scmp.ne.s32.totalorder %s4876_s23, %s4466_s27  ;;  %p4475_p7 = scmp.lt.s32.totalorder %s4466_s27, %s4466_s27 }
  0xdb   : > { %p4469_p2 = pnand %p4467_p10, %p4751_p0  ;;  %p4476_p8 = por %p4475_p7, %p4474_p4 }
  0xdd   : > { %p4470_p3 = pneg %p4469_p2 }
  0xdf   : > { %p4477_p11 = pnand %p4476_p8, %p4470_p3 }
  0xe1   : > { %4480 = shalt.err (!%p4477_p11)
}
  0xe2   : > { %4179 = dma.hbm_to_vmem [thread:$0]  (!%p4735_p12), %s5681_s11, 2048, %s4876_s23, [#allocation15], %s5729_s16, %s5729_s16, %s5728_s30  }
  0xe3   : > { %p5730_p13 = scmp.ne.s32.totalorder %s5722_s21, 0 }
  0xe4   : > { %p5731_p0 = scmp.eq.s32.totalorder (!%p5730_p13), %s4699_s28, 0 }
  0xe5   : > { %573 = sbr.rel (%p5730_p13) target bundleno = 3630 (0xe2e), region = 88 }
  0xec   : > { %4526 = dma.done.wait (%p5731_p0), [#allocation3], 48   ;;  %p5732_p1 = pmov %p5731_p0 }
  0xed   : > { %p5733_p6 = pmov %p5731_p0 }
  0xee   : > { %4528 = vsyncadd (%p5732_p1), [#allocation3], 4294967248 }
  0xef   : > { %4530 = dma.done.wait (%p5733_p6), [#allocation6], 288   ;;  %p5734_p5 = pmov %p5731_p0 }
  0xf0   : > { %p5735_p9 = pmov %p5731_p0 }
  0xf1   : > { %4532 = vsyncadd (%p5734_p5), [#allocation6], 4294967008 }
  0xf2   : > { %4534 = dma.done.wait (%p5735_p9), [#allocation9], 64   ;;  %p5736_p12 = pmov %p5731_p0 }
  0xf3   : > { %p5737_p10 = pmov %p5731_p0 }
  0xf4   : > { %4536 = vsyncadd (%p5736_p12), [#allocation9], 4294967232 }
  0xf5   : > { %4538 = dma.done.wait (%p5737_p10), [#allocation12], 2304   ;;  %p5738_p2 = pmov %p5731_p0 }
  0xf6   : > { %p5739_p3 = pmov %p5731_p0 }
  0xf7   : > { %4540 = vsyncadd (%p5738_p2), [#allocation12], 4294964992 }
  0xf8   : > { %4542 = dma.done.wait (%p5739_p3), [#allocation15], 2048   ;;  %p5740_p4 = pmov %p5731_p0 }
  0xf9   : > { %p652_p7 = scmp.lt.s32.totalorder %s4699_s28, 1  ;;  %v4577_v0 = vmov 0   ;;  %s5741_s16 = sld [smem:[#allocation30_spill]]  ;;  %v657_v17 = vlaneseq  ;;  %vm1117_vm0 = vcmask 1031168   ;;  %v4578_v28 = vmov 0.0   ;;  %v2487_v48 = vld [vmem:[#allocation13 + $0x20] sm:$0xff] }
  0xfa   : > { %4544 = vsyncadd (%p5740_p4), [#allocation15], 4294965248  ;;  %4256 = vset.pattern.permute.xlu1 %v4577_v0  ;;  %4255 = vset.pattern.permute.xlu0 %v4577_v0  ;;  %v5029_v53 = vld [vmem:[#allocation2 + $0x1] ss:$0 sm:$0xff]  ;;  %v5032_v57 = vld [vmem:[#allocation2 + $0x2] ss:$0 sm:$0xff] }
  0xfb   : > { %s653_s21 = scalar_select %p652_p7, %s4699_s28, 1  ;;  %v658_v18 = vshrl.u32 %v657_v17, 7  ;;  %v4952_v22 = vand.u32 127, %v657_v17  ;;  %v5036_v62 = vld [vmem:[#allocation2] ss:$0 sm:$0xff] }
  0xfc   : > { %s4580_s22 = smov 4   ;;  %s4581_s26 = smov 8  }
  0xfd   : > { %s3333_s18 = sshll.u32 %s653_s21, 7  ;;  %v659_v19 = vadd.s32 8, %v658_v18  ;;  %v668_v20 = vmul.u32 2, %v658_v18  ;;  %v660_v25 = vadd.s32 16, %v658_v18  ;;  %v661_v26 = vadd.s32 24, %v658_v18  ;;  %s4582_s27 = smov 16  }
  0xfe   : > { %v662_v33 = vadd.s32 32, %v658_v18  ;;  %v663_v34 = vadd.s32 40, %v658_v18  ;;  %v664_v41 = vadd.s32 48, %v658_v18  ;;  %v665_v47 = vadd.s32 56, %v658_v18  ;;  %s4583_s24 = smov 32   ;;  %s4586_s30 = smov 64  }
  0xff   : > { %s656_s23 = scalar_lea.vmem %s5741_s16, %s3333_s18  ;;  %v669_v21 = vmul.u32 2, %v659_v19  ;;  %v700_v23 = vadd.s32 1, %v668_v20  ;;  %vm676_vm1 = vcmp.eq.s32.totalorder %v4952_v22, %v668_v20  ;;  %v670_v31 = vmul.u32 2, %v660_v25  ;;  %s5771_s1 = sld [smem:[#allocation34_spill]] }
 0x100   : > { %v734_v1 = vld [vmem:[%s656_s23 + $0x10] sm:$0xff]  ;;  %v732_v2 = vld [vmem:[%s656_s23] sm:$0xff]  ;;  %v735_v3 = vld [vmem:[%s656_s23 + $0x18] sm:$0xff]  ;;  %v4964_v29 = vsel %vm676_vm1, 1.0, %v4578_v28  ;;  %v671_v32 = vmul.u32 2, %v661_v26  ;;  %v672_v39 = vmul.u32 2, %v662_v33 }
 0x101   : > { %761 = vperm.xlu1 %4256, %v734_v1   ;;  %751 = vperm.xlu0 %4255, %v732_v2   ;;  %v733_v4 = vld [vmem:[%s656_s23 + $0x8] sm:$0xff]  ;;  %v736_v6 = vld [vmem:[%s656_s23 + $0x20] sm:$0xff]  ;;  %v739_v7 = vld [vmem:[%s656_s23 + $0x38] sm:$0xff]  ;;  %v4954_v24 = vadd.s32 1, %v669_v21  ;;  %vm708_vm2 = vcmp.eq.s32.totalorder %v4952_v22, %v700_v23  ;;  %vm4959_vm3 = vcmp.eq.s32.totalorder %v4952_v22, %v669_v21  ;;  %vm4976_vm5 = vcmp.eq.s32.totalorder %v4952_v22, %v670_v31  ;;  %s5772_s4 = sld [smem:[#allocation28_spill]]  ;;  %s650_s17 = sand.u32 1, %s4555_s25  }
 0x102   : > { %v737_v5 = vld [vmem:[%s656_s23 + $0x28] sm:$0xff]  ;;  %v738_v8 = vld [vmem:[%s656_s23 + $0x30] sm:$0xff]  ;;  %v740_v10 = vld [vmem:[%s656_s23 + $0x40] sm:$0xff]  ;;  %v4967_v30 = vsel %vm708_vm2, 1.0, %v4578_v28  ;;  %3550 = vmatprep.mubr.msk.f32.mxu0 %vm1117_vm0, %v4964_v29  ;;  %v4980_v36 = vadd.s32 1, %v670_v31  ;;  %vm4983_vm6 = vcmp.eq.s32.totalorder %v4952_v22, %v671_v32  ;;  %v4987_v38 = vadd.s32 1, %v671_v32 }
 0x103   : > { %v741_v9 = vld [vmem:[%s656_s23 + $0x48] sm:$0xff]  ;;  %v743_v11 = vld [vmem:[%s656_s23 + $0x58] sm:$0xff]  ;;  %v742_v12 = vld [vmem:[%s656_s23 + $0x50] sm:$0xff]  ;;  %vm709_vm4 = vcmp.eq.s32.totalorder %v4952_v22, %v4954_v24  ;;  %3594 = vmatprep.mubr.msk.f32.mxu1 %vm1117_vm0, %v4967_v30  ;;  %v673_v40 = vmul.u32 2, %v663_v34  ;;  %vm4994_vm9 = vcmp.eq.s32.totalorder %v4952_v22, %v672_v39  ;;  %v4998_v43 = vadd.s32 1, %v672_v39  ;;  %s5773_s0 = sld [smem:[#allocation35_spill]] }
 0x104   : > { %v745_v13 = vld [vmem:[%s656_s23 + $0x68] sm:$0xff]  ;;  %v744_v14 = vld [vmem:[%s656_s23 + $0x60] sm:$0xff]  ;;  %v747_v15 = vld [vmem:[%s656_s23 + $0x78] sm:$0xff]  ;;  %vm710_vm7 = vcmp.eq.s32.totalorder %v4952_v22, %v4980_v36  ;;  %vm711_vm8 = vcmp.eq.s32.totalorder %v4952_v22, %v4987_v38  ;;  %v674_v46 = vmul.u32 2, %v664_v41  ;;  %v675_v50 = vmul.u32 2, %v665_v47  ;;  %s5774_s29 = sld [smem:[#allocation36_spill]] }
 0x105   : > { %766 = vperm.xlu1 %4256, %v735_v3   ;;  %756 = vperm.xlu0 %4255, %v733_v4   ;;  %v746_v16 = vld [vmem:[%s656_s23 + $0x70] sm:$0xff]  ;;  %vm5001_vm10 = vcmp.eq.s32.totalorder %v4952_v22, %v673_v40  ;;  %v5005_v45 = vadd.s32 1, %v673_v40  ;;  %vm712_vm11 = vcmp.eq.s32.totalorder %v4952_v22, %v4998_v43  ;;  %vm5705_vm2 = vcmask 1046528   ;;  %s3073_s16 = scalar_lea.sflag [#allocation4], %s650_s17 }
 0x106   : > { %vm5012_vm13 = vcmp.eq.s32.totalorder %v4952_v22, %v674_v46  ;;  %v5016_v49 = vadd.s32 1, %v674_v46  ;;  %vm5021_vm15 = vcmp.eq.s32.totalorder %v4952_v22, %v675_v50  ;;  %v5025_v52 = vadd.s32 1, %v675_v50  ;;  %v5054_v46 = vld [vmem:[#allocation5] ss:$0 sm:$0xff] }
 0x107   : > { %vm713_vm12 = vcmp.eq.s32.totalorder %v4952_v22, %v5005_v45  ;;  %vm995_vm1 = vcmask 1045504   ;;  %v5205_v24 = vsel %vm4983_vm6, 1.0, %v4578_v28  ;;  %v5211_v27 = vsel %vm711_vm8, 1.0, %v4578_v28  ;;  %p5775_p11 = scmp.ne.s32.totalorder %s5772_s4, 0 }
 0x108   : > { %v3245_v35 = vsel %vm4994_vm9, 1.0, %v4578_v28  ;;  %v3253_v36 = vsel %vm712_vm11, 1.0, %v4578_v28  ;;  %v3246_v37 = vsel %vm5001_vm10, 1.0, %v4578_v28  ;;  %v3254_v38 = vsel %vm713_vm12, 1.0, %v4578_v28 }
 0x109   : > { %776 = vperm.xlu1 %4256, %v737_v5   ;;  %771 = vperm.xlu0 %4255, %v736_v6   ;;  %v3247_v42 = vsel %vm5012_vm13, 1.0, %v4578_v28  ;;  %v3248_v44 = vsel %vm5021_vm15, 1.0, %v4578_v28  ;;  %vm1473_vm13 = vcmask 31744   ;;  %vm1493_vm15 = vcmask 97280  }
 0x10d   : > { %786 = vperm.xlu1 %4256, %v739_v7   ;;  %781 = vperm.xlu0 %4255, %v738_v8  }
 0x111   : > { %796 = vperm.xlu1 %4256, %v741_v9   ;;  %791 = vperm.xlu0 %4255, %v740_v10  }
 0x115   : > { %806 = vperm.xlu1 %4256, %v743_v11   ;;  %801 = vperm.xlu0 %4255, %v742_v12  }
 0x119   : > { %816 = vperm.xlu1 %4256, %v745_v13   ;;  %811 = vperm.xlu0 %4255, %v744_v14  }
 0x11d   : > { %826 = vperm.xlu1 %4256, %v747_v15   ;;  %821 = vperm.xlu0 %4255, %v746_v16  }
 0x180   : > { %v762_v54 = vpop.permute.xlu1 %761  ;;  %v752_v55 = vpop.permute.xlu0 %751 }
 0x181   : > { %v861_v56 = vmul.f32 %v5029_v53, %v762_v54  ;;  %v965_v58 = vmul.f32 %v5032_v57, %v762_v54  ;;  %v859_v59 = vmul.f32 %v5029_v53, %v752_v55  ;;  %v963_v0 = vmul.f32 %v5032_v57, %v752_v55 }
 0x182   : > { %v837_v5 = vmul.f32 %v5036_v62, %v762_v54  ;;  %v835_v9 = vmul.f32 %v5036_v62, %v752_v55 }
 0x183   : > { %v895_v63 = vrot.slane %v861_v56, 1  ;;  %v999_v6 = vrot.slane %v965_v58, 2  ;;  %v892_v10 = vrot.slane %v859_v59, 1  ;;  %v996_v15 = vrot.slane %v963_v0, 2 }
 0x184   : > { %v767_v60 = vpop.permute.xlu1 %766  ;;  %v757_v61 = vpop.permute.xlu0 %756 }
 0x185   : > { %v862_v1 = vmul.f32 %v5029_v53, %v767_v60  ;;  %v966_v2 = vmul.f32 %v5032_v57, %v767_v60  ;;  %v860_v3 = vmul.f32 %v5029_v53, %v757_v61  ;;  %v964_v4 = vmul.f32 %v5032_v57, %v757_v61 }
 0x186   : > { %v836_v17 = vmul.f32 %v5036_v62, %v757_v61  ;;  %v838_v47 = vmul.f32 %v5036_v62, %v767_v60 }
 0x187   : > { %v897_v7 = vrot.slane %v862_v1, 1  ;;  %v1001_v8 = vrot.slane %v966_v2, 2  ;;  %v893_v11 = vrot.slane %v860_v3, 1  ;;  %v997_v12 = vrot.slane %v964_v4, 2 }
 0x188   : > { %v777_v13 = vpop.permute.xlu1 %776  ;;  %v772_v14 = vpop.permute.xlu0 %771 }
 0x189   : > { %v898_v16 = vsel %vm5705_vm2, %v895_v63, %v897_v7  ;;  %v864_v18 = vmul.f32 %v5029_v53, %v777_v13  ;;  %v894_v20 = vsel %vm5705_vm2, %v892_v10, %v893_v11  ;;  %v896_v21 = vsel %vm5705_vm2, %v893_v11, %v895_v63 }
 0x18a   : > { %v941_v19 = vadd.f32 %v898_v16, %v837_v5  ;;  %v1002_v23 = vsel %vm995_vm1, %v999_v6, %v1001_v8  ;;  %v939_v25 = vadd.f32 %v894_v20, %v835_v9  ;;  %v940_v26 = vadd.f32 %v896_v21, %v836_v17 }
 0x18b   : > { %v998_v31 = vsel %vm995_vm1, %v996_v15, %v997_v12  ;;  %v901_v33 = vrot.slane %v864_v18, 1  ;;  %v968_v34 = vmul.f32 %v5032_v57, %v777_v13  ;;  %v863_v39 = vmul.f32 %v5029_v53, %v772_v14 }
 0x18c   : > { %v1045_v32 = vadd.f32 %v1002_v23, %v941_v19  ;;  %v787_v40 = vpop.permute.xlu1 %786  ;;  %v782_v41 = vpop.permute.xlu0 %781  ;;  %v1043_v50 = vadd.f32 %v998_v31, %v939_v25  ;;  %v967_v54 = vmul.f32 %v5032_v57, %v772_v14  ;;  %v1000_v55 = vsel %vm995_vm1, %v997_v12, %v999_v6 }
 0x18d   : > { %v840_v56 = vmul.f32 %v5036_v62, %v777_v13  ;;  %v899_v58 = vrot.slane %v863_v39, 1  ;;  %v866_v59 = vmul.f32 %v5029_v53, %v787_v40  ;;  %v1044_v61 = vadd.f32 %v1000_v55, %v940_v26 }
 0x18e   : > { %v1005_v63 = vrot.slane %v968_v34, 2  ;;  %v839_v0 = vmul.f32 %v5036_v62, %v772_v14  ;;  %v1003_v1 = vrot.slane %v967_v54, 2  ;;  %v5063_v2 = vmul.f32 %v5054_v46, %v1045_v32 }
 0x18f   : > { %v900_v60 = vsel %vm5705_vm2, %v897_v7, %v899_v58  ;;  %v902_v3 = vsel %vm5705_vm2, %v899_v58, %v901_v33  ;;  %v842_v4 = vmul.f32 %v5036_v62, %v787_v40  ;;  %v1064_v6 = vmul.f32 %v5054_v46, %v1043_v50 }
 0x190   : > { %v797_v5 = vpop.permute.xlu1 %796  ;;  %v942_v9 = vadd.f32 %v900_v60, %v838_v47  ;;  %v943_v10 = vadd.f32 %v902_v3, %v839_v0  ;;  %v970_v11 = vmul.f32 %v5032_v57, %v787_v40  ;;  %v792_v12 = vpop.permute.xlu0 %791  ;;  %v1004_v13 = vsel %vm995_vm1, %v1001_v8, %v1003_v1 }
 0x191   : > { %v905_v14 = vrot.slane %v866_v59, 1  ;;  %v865_v15 = vmul.f32 %v5029_v53, %v782_v41  ;;  %v969_v16 = vmul.f32 %v5032_v57, %v782_v41  ;;  %v1065_v7 = vmul.f32 %v5054_v46, %v1044_v61 }
 0x192   : > { %v1006_v17 = vsel %vm995_vm1, %v1003_v1, %v1005_v63  ;;  %v1046_v18 = vadd.f32 %v1004_v13, %v942_v9  ;;  %v868_v19 = vmul.f32 %v5029_v53, %v797_v5  ;;  %v972_v23 = vmul.f32 %v5032_v57, %v797_v5  ;;  %v5095_v9 = vld [vmem:[#allocation5 + $0x1] ss:$0 sm:$0xff] }
 0x193   : > { %v1047_v20 = vadd.f32 %v1006_v17, %v943_v10  ;;  %v903_v21 = vrot.slane %v865_v15, 1  ;;  %v867_v25 = vmul.f32 %v5029_v53, %v792_v12  ;;  %v1009_v26 = vrot.slane %v970_v11, 2 }
 0x194   : > { %v841_v8 = vmul.f32 %v5036_v62, %v782_v41  ;;  %v1007_v31 = vrot.slane %v969_v16, 2  ;;  %v909_v32 = vrot.slane %v868_v19, 1  ;;  %v807_v34 = vpop.permute.xlu1 %806  ;;  %v844_v47 = vmul.f32 %v5036_v62, %v797_v5 }
 0x195   : > { %v904_v39 = vsel %vm5705_vm2, %v901_v33, %v903_v21  ;;  %v906_v40 = vsel %vm5705_vm2, %v903_v21, %v905_v14  ;;  %v843_v50 = vmul.f32 %v5036_v62, %v792_v12  ;;  %v907_v58 = vrot.slane %v867_v25, 1  ;;  %v802_v33 = vpop.permute.xlu0 %801 }
 0x196   : > { %v944_v54 = vadd.f32 %v904_v39, %v840_v56  ;;  %v945_v55 = vadd.f32 %v906_v40, %v841_v8  ;;  %v971_v59 = vmul.f32 %v5032_v57, %v792_v12  ;;  %v1067_v61 = vmul.f32 %v5054_v46, %v1046_v18 }
 0x197   : > { %v5086_v41 = vmul.f32 %v5054_v46, %v1047_v20  ;;  %v1013_v0 = vrot.slane %v972_v23, 2  ;;  %v5089_v1 = vmul.f32 %v5029_v53, %v807_v34  ;;  %v1008_v60 = vsel %vm995_vm1, %v1005_v63, %v1007_v31 }
 0x198   : > { %v1010_v3 = vsel %vm995_vm1, %v1007_v31, %v1009_v26  ;;  %v908_v56 = vsel %vm5705_vm2, %v905_v14, %v907_v58  ;;  %v910_v5 = vsel %vm5705_vm2, %v907_v58, %v909_v32  ;;  %v1048_v10 = vadd.f32 %v1008_v60, %v944_v54  ;;  %v817_v18 = vpop.permute.xlu1 %816 }
 0x199   : > { %v1049_v11 = vadd.f32 %v1010_v3, %v945_v55  ;;  %v946_v12 = vadd.f32 %v908_v56, %v842_v4  ;;  %v1011_v13 = vrot.slane %v971_v59, 2  ;;  %v846_v15 = vmul.f32 %v5036_v62, %v807_v34  ;;  %v812_v55 = vpop.permute.xlu0 %811 }
 0x19a   : > { %v913_v16 = vrot.slane %v5089_v1, 1  ;;  %v974_v17 = vmul.f32 %v5032_v57, %v807_v34  ;;  %v869_v63 = vmul.f32 %v5029_v53, %v802_v33  ;;  %v947_v19 = vadd.f32 %v910_v5, %v843_v50 }
 0x19b   : > { %v1012_v14 = vsel %vm995_vm1, %v1009_v26, %v1011_v13  ;;  %v973_v20 = vmul.f32 %v5032_v57, %v802_v33  ;;  %v1085_v21 = vadd.f32 %v5095_v9, %v1064_v6  ;;  %v845_v4 = vmul.f32 %v5036_v62, %v802_v33 }
 0x19c   : > { %v1050_v23 = vadd.f32 %v1012_v14, %v946_v12  ;;  %v911_v25 = vrot.slane %v869_v63, 1  ;;  %v1086_v8 = vadd.f32 %v5095_v9, %v1065_v7  ;;  %v5107_v31 = vmul.f32 %v5054_v46, %v1048_v10  ;;  %v827_v12 = vpop.permute.xlu1 %826 }
 0x19d   : > { %v5110_v34 = vmul.f32 %v5054_v46, %v1049_v11  ;;  %v1015_v39 = vrot.slane %v973_v20, 2  ;;  %v5113_v40 = vmul.f32 %v5029_v53, %v817_v18  ;;  %v1014_v26 = vsel %vm995_vm1, %v1011_v13, %v1013_v0 }
 0x19e   : > { %v912_v6 = vsel %vm5705_vm2, %v909_v32, %v911_v25  ;;  %v914_v50 = vsel %vm5705_vm2, %v911_v25, %v913_v16  ;;  %v1101_v54 = vmax.f32 %v1085_v21, 0.0  ;;  %v1051_v58 = vadd.f32 %v1014_v26, %v947_v19  ;;  %v822_v25 = vpop.permute.xlu0 %821 }
 0x19f   : > { %v1017_v7 = vrot.slane %v974_v17, 2  ;;  %v948_v59 = vadd.f32 %v912_v6, %v844_v47  ;;  %v848_v1 = vmul.f32 %v5036_v62, %v817_v18  ;;  %v5120_v33 = vmul.f32 %v5054_v46, %v1050_v23 }
 0x1a0   : > { %v949_v60 = vadd.f32 %v914_v50, %v845_v4  ;;  %v1016_v3 = vsel %vm995_vm1, %v1013_v0, %v1015_v39  ;;  %v1102_v56 = vmax.f32 %v1086_v8, 0.0  ;;  %v917_v5 = vrot.slane %v5113_v40, 1 }
 0x1a1   : > { %v976_v32 = vmul.f32 %v5032_v57, %v817_v18  ;;  %v871_v10 = vmul.f32 %v5029_v53, %v812_v55  ;;  %v975_v11 = vmul.f32 %v5032_v57, %v812_v55  ;;  %v1052_v13 = vadd.f32 %v1016_v3, %v948_v59 }
 0x1a2   : > { %v3874_v47 = vpack.c.bf16 %v1102_v56, %v1101_v54  ;;  %v1087_v17 = vadd.f32 %v5095_v9, %v5063_v2  ;;  %v1088_v63 = vadd.f32 %v5095_v9, %v1067_v61  ;;  %v1018_v19 = vsel %vm995_vm1, %v1015_v39, %v1017_v7 }
 0x1a3   : > { %v847_v0 = vmul.f32 %v5036_v62, %v812_v55  ;;  %v915_v14 = vrot.slane %v871_v10, 1  ;;  %v1019_v20 = vrot.slane %v975_v11, 2  ;;  %v1053_v21 = vadd.f32 %v1018_v19, %v949_v60 }
 0x1a4   : > { %3875 = vmatprep.subr.bf16.mxu0 %v3874_v47  ;;  %3909 = vmatprep.subr.bf16.mxu1 %v3874_v47  ;;  %v1103_v18 = vmax.f32 %v1087_v17, 0.0  ;;  %v1104_v23 = vmax.f32 %v1088_v63, 0.0  ;;  %v874_v4 = vmul.f32 %v5029_v53, %v827_v12  ;;  %v1072_v8 = vmul.f32 %v5054_v46, %v1051_v58 }
 0x1a5   : > { %3877 = vmatpush3.bf16.msra.mxu0 %v3874_v47  ;;  %3911 = vmatpush3.bf16.msra.mxu1 %v3874_v47  ;;  %v1021_v2 = vrot.slane %v976_v32, 2  ;;  %v916_v61 = vsel %vm5705_vm2, %v913_v16, %v915_v14  ;;  %v918_v39 = vsel %vm5705_vm2, %v915_v14, %v917_v5  ;;  %v1073_v40 = vmul.f32 %v5054_v46, %v1052_v13 }
 0x1a6   : > { %v950_v26 = vadd.f32 %v916_v61, %v846_v15  ;;  %v951_v6 = vadd.f32 %v918_v39, %v847_v0  ;;  %v3878_v50 = vpack.c.bf16 %v1104_v23, %v1103_v18  ;;  %v1020_v54 = vsel %vm995_vm1, %v1017_v7, %v1019_v20 }
 0x1a7   : > { %v921_v55 = vrot.slane %v874_v4, 1  ;;  %v978_v59 = vmul.f32 %v5032_v57, %v827_v12  ;;  %v873_v60 = vmul.f32 %v5029_v53, %v822_v25  ;;  %v1074_v58 = vmul.f32 %v5054_v46, %v1053_v21 }
 0x1a8   : > { %v1054_v3 = vadd.f32 %v1020_v54, %v950_v26  ;;  %3879 = vmatprep.subr.bf16.mxu0 %v3878_v50  ;;  %3913 = vmatprep.subr.bf16.mxu1 %v3878_v50  ;;  %v977_v16 = vmul.f32 %v5032_v57, %v822_v25  ;;  %v1022_v56 = vsel %vm995_vm1, %v1019_v20, %v1021_v2 }
 0x1a9   : > { %3881 = vmatpush3.bf16.msra.mxu0 %v3878_v50  ;;  %3915 = vmatpush3.bf16.msra.mxu1 %v3878_v50  ;;  %v850_v15 = vmul.f32 %v5036_v62, %v827_v12  ;;  %v919_v32 = vrot.slane %v873_v60, 1  ;;  %v1089_v7 = vadd.f32 %v5095_v9, %v5086_v41  ;;  %v1055_v10 = vadd.f32 %v1022_v56, %v951_v6 }
 0x1aa   : > { %v849_v53 = vmul.f32 %v5036_v62, %v822_v25  ;;  %v1023_v11 = vrot.slane %v977_v16, 2  ;;  %v1090_v13 = vadd.f32 %v5095_v9, %v5107_v31  ;;  %v1025_v17 = vrot.slane %v978_v59, 2 }
 0x1ab   : > { %v954_v47 = vadd.f32 %v921_v55, %v850_v15  ;;  %v920_v57 = vsel %vm5705_vm2, %v917_v5, %v919_v32  ;;  %v922_v63 = vsel %vm5705_vm2, %v919_v32, %v921_v55  ;;  %v1075_v19 = vmul.f32 %v5054_v46, %v1054_v3 }
 0x1ac   : > { %v952_v12 = vadd.f32 %v920_v57, %v848_v1  ;;  %v953_v0 = vadd.f32 %v922_v63, %v849_v53  ;;  %v1105_v14 = vmax.f32 %v1089_v7, 0.0  ;;  %v1024_v41 = vsel %vm995_vm1, %v1021_v2, %v1023_v11  ;;  %v1492_v57 = vld [vmem:[#allocation7 + $0x8] sm:$0xf] }
 0x1ad   : > { %v1106_v20 = vmax.f32 %v1090_v13, 0.0  ;;  %v1091_v62 = vadd.f32 %v5095_v9, %v5110_v34  ;;  %v1092_v31 = vadd.f32 %v5095_v9, %v5120_v33  ;;  %v1076_v21 = vmul.f32 %v5054_v46, %v1055_v10 }
 0x1ae   : > { %v1056_v18 = vadd.f32 %v1024_v41, %v952_v12  ;;  %v1093_v5 = vadd.f32 %v5095_v9, %v1072_v8  ;;  %v1094_v23 = vadd.f32 %v5095_v9, %v1073_v40  ;;  %v1026_v1 = vsel %vm995_vm1, %v1023_v11, %v1025_v17 }
 0x1af   : > { %v3882_v4 = vpack.c.bf16 %v1106_v20, %v1105_v14  ;;  %v1107_v25 = vmax.f32 %v1091_v62, 0.0  ;;  %v1108_v61 = vmax.f32 %v1092_v31, 0.0  ;;  %v1058_v2 = vadd.f32 %v1025_v17, %v954_v47 }
 0x1b0   : > { %v1057_v39 = vadd.f32 %v1026_v1, %v953_v0  ;;  %v1077_v26 = vmul.f32 %v5054_v46, %v1056_v18  ;;  %v1110_v34 = vmax.f32 %v1094_v23, 0.0  ;;  %v1109_v6 = vmax.f32 %v1093_v5, 0.0 }
 0x1b1   : > { %3883 = vmatprep.subr.bf16.mxu0 %v3882_v4  ;;  %3917 = vmatprep.subr.bf16.mxu1 %v3882_v4  ;;  %v3886_v33 = vpack.c.bf16 %v1108_v61, %v1107_v25  ;;  %v1095_v50 = vadd.f32 %v5095_v9, %v1074_v58  ;;  %v1096_v8 = vadd.f32 %v5095_v9, %v1075_v19  ;;  %vm4579_vm2 = vmmov 1  }
 0x1b2   : > { %3885 = vmatpush3.bf16.msra.mxu0 %v3882_v4  ;;  %3919 = vmatpush3.bf16.msra.mxu1 %v3882_v4  ;;  %v3890_v40 = vpack.c.bf16 %v1110_v34, %v1109_v6  ;;  %v1098_v55 = vadd.f32 %v5095_v9, %v1077_v26  ;;  %v1079_v59 = vmul.f32 %v5054_v46, %v1058_v2  ;;  %vm3903_vm14 = vmpackc.low %vm995_vm1, %vm4579_vm2  ;;  %v5181_v13 = vsel %vm709_vm4, 1.0, %v4578_v28 }
 0x1b3   : > { %3887 = vmatprep.subr.bf16.mxu0 %v3886_v33  ;;  %3921 = vmatprep.subr.bf16.mxu1 %v3886_v33  ;;  %v1112_v54 = vmax.f32 %v1096_v8, 0.0  ;;  %v1078_v60 = vmul.f32 %v5054_v46, %v1057_v39  ;;  %v1111_v3 = vmax.f32 %v1095_v50, 0.0  ;;  %v1097_v16 = vadd.f32 %v5095_v9, %v1076_v21 }
 0x1b4   : > { %v1114_v56 = vmax.f32 %v1098_v55, 0.0  ;;  %v1100_v7 = vadd.f32 %v5095_v9, %v1079_v59  ;;  %v5186_v47 = vsel %vm4976_vm5, 1.0, %v4578_v28  ;;  %v5192_v17 = vsel %vm710_vm7, 1.0, %v4578_v28 }
 0x1b5   : > { %v3894_v58 = vpack.c.bf16 %v1112_v54, %v1111_v3  ;;  %v1113_v15 = vmax.f32 %v1097_v16, 0.0  ;;  %v1099_v32 = vadd.f32 %v5095_v9, %v1078_v60  ;;  %v5175_v9 = vsel %vm4959_vm3, 1.0, %v4578_v28 }
 0x1b6   : > { %3889 = vmatpush3.bf16.msra.mxu0 %v3886_v33  ;;  %3923 = vmatpush3.bf16.msra.mxu1 %v3886_v33  ;;  %v1116_v53 = vmax.f32 %v1100_v7, 0.0  ;;  %vm5756_vm3 = vcmp.eq.s32.totalorder %v4952_v22, %v5016_v49  ;;  %vm5757_vm4 = vcmp.eq.s32.totalorder %v4952_v22, %v5025_v52  ;;  %vm1518_vm5 = vcmask 1043456   ;;  %v1491_v49 = vld [vmem:[#allocation7] sm:$0xff] }
 0x1b7   : > { %3891 = vmatprep.subr.bf16.mxu0 %v3890_v40  ;;  %3925 = vmatprep.subr.bf16.mxu1 %v3890_v40  ;;  %v3898_v10 = vpack.c.bf16 %v1114_v56, %v1113_v15  ;;  %v1115_v46 = vmax.f32 %v1099_v32, 0.0  ;;  %v3255_v43 = vsel %vm5756_vm3, 1.0, %v4578_v28  ;;  %v3256_v45 = vsel %vm5757_vm4, 1.0, %v4578_v28  ;;  %vm5255_vm6 = vmpackc.low %vm1518_vm5, %vm4579_vm2 }
 0x1b8   : > { %v3942_v51 = vpack.c.bf16 %v1492_v57, %v1491_v49  ;;  %vm1661_vm3 = vcmask 498688   ;;  %vm1670_vm4 = vcmask 1044480  }
 0x1b9   : > { %v3902_v11 = vpack.c.bf16 %v1116_v53, %v1115_v46 }
 0x1ba   : > { %3893 = vmatpush3.bf16.msra.mxu0 %v3890_v40  ;;  %3927 = vmatpush3.bf16.msra.mxu1 %v3890_v40 }
 0x1bb   : > { %3895 = vmatprep.subr.bf16.mxu0 %v3894_v58  ;;  %3929 = vmatprep.subr.bf16.mxu1 %v3894_v58 }
 0x1be   : > { %3897 = vmatpush3.bf16.msra.mxu0 %v3894_v58  ;;  %3931 = vmatpush3.bf16.msra.mxu1 %v3894_v58 }
 0x1bf   : > { %3899 = vmatprep.subr.bf16.mxu0 %v3898_v10  ;;  %3933 = vmatprep.subr.bf16.mxu1 %v3898_v10 }
 0x1c2   : > { %3901 = vmatpush3.bf16.msra.mxu0 %v3898_v10  ;;  %3935 = vmatpush3.bf16.msra.mxu1 %v3898_v10 }
 0x1c3   : > { %3904 = vmatprep.subr.msk.bf16.mxu0 %vm3903_vm14, %v3902_v11  ;;  %3938 = vmatprep.subr.msk.bf16.mxu1 %vm3903_vm14, %v3902_v11 }
 0x1c6   : > { %3907 = vmatpush3.bf16.msk.msra.mxu0 %vm3903_vm14, %v3902_v11  ;;  %3941 = vmatpush3.bf16.msk.msra.mxu1 %vm3903_vm14, %v3902_v11  ;;  %vm1482_vm14 = vcmask 64512  }
 0x1c7   : > { %3944 = vmatprep.subr.msk.bf16.mxu1 %vm5255_vm6, %v3942_v51 }
 0x1c9   : > { %3551 = vmatmul.mubr.msk.f32.vlgmr.msra.gmra.mrb[0].mxu0 %vm1117_vm0, %v5175_v9  ;;  %3595 = vmatmul.mubr.msk.f32.vlgmr.msra.gmra.mrb[0].mxu1 %vm1117_vm0, %v5181_v13 }
 0x1ca   : > { %3553 = vmatprep.mubr.msk.f32.mxu0 %vm1117_vm0, %v5186_v47  ;;  %3597 = vmatprep.mubr.msk.f32.mxu1 %vm1117_vm0, %v5192_v17 }
 0x1cb   : > { %3947 = vmatpush3.bf16.msk.msra.mxu1 %vm5255_vm6, %v3942_v51 }
 0x1cd   : > { %3554 = vmatmul.mubr.msk.f32.gmra.mrb[2].mxu0 %vm1117_vm0, %v5205_v24  ;;  %3598 = vmatmul.mubr.msk.f32.gmra.mrb[2].mxu1 %vm1117_vm0, %v5211_v27 }
 0x1ce   : > { %3556 = vmatprep.mubr.msk.f32.mxu0 %vm1117_vm0, %v3245_v35  ;;  %3600 = vmatprep.mubr.msk.f32.mxu1 %vm1117_vm0, %v3253_v36 }
 0x1d1   : > { %3557 = vmatmul.mubr.msk.f32.gmra.mrb[4].mxu0 %vm1117_vm0, %v3246_v37  ;;  %3601 = vmatmul.mubr.msk.f32.gmra.mrb[4].mxu1 %vm1117_vm0, %v3254_v38 }
 0x1d2   : > { %3559 = vmatprep.mubr.msk.f32.mxu0 %vm1117_vm0, %v3247_v42  ;;  %3603 = vmatprep.mubr.msk.f32.mxu1 %vm1117_vm0, %v3255_v43 }
 0x1d5   : > { %3560 = vmatmul.mubr.msk.f32.gmra.mrb[6].mxu0 %vm1117_vm0, %v3248_v44  ;;  %3604 = vmatmul.mubr.msk.f32.gmra.mrb[6].mxu1 %vm1117_vm0, %v3256_v45  ;;  %vm5760_vm0 = vcmask 1046528  }
 0x1d6   : > { %vm5761_vm7 = vmmov %vm5760_vm0  ;;  %3660 = vmatprep.mubr.msk.f32.mxu0 %vm1661_vm3, %v4967_v30 }
 0x1d7   : > { %vm5762_vm8 = vmmov %vm5760_vm0 }
 0x1d8   : > { %vm5763_vm9 = vmmov %vm5760_vm0 }
 0x1d9   : > { %vm5764_vm10 = vmmov %vm5760_vm0 }
 0x1da   : > { %vm5765_vm11 = vmmov %vm5760_vm0 }
 0x1db   : > { %vm5766_vm12 = vmmov %vm5760_vm0 }
 0x29c   : > { %v3552_v63 = vpop.f32.mrb[0].mxu0  ;;  %v3596_v19 = vpop.f32.mrb[0].mxu1 }
 0x29d   : > { %v5259_v12 = vmax.f32 %v3552_v63, %v3596_v19  ;;  %v1211_v22 = vpop.f32.mrb[1].mxu0  ;;  %v1340_v52 = vpop.f32.mrb[1].mxu1 }
 0x29e   : > { %v5263_v0 = vmax.f32 %v1211_v22, %v1340_v52 }
 0x29f   : > { %v1396_v14 = vrot.slane %v5259_v12, 1  ;;  %v1435_v31 = vrot.slane %v5259_v12, 2 }
 0x2a0   : > { %v1395_v41 = vrot.slane %v5263_v0, 1  ;;  %v3555_v20 = vpop.f32.mrb[2].mxu0  ;;  %v3599_v62 = vpop.f32.mrb[2].mxu1  ;;  %v1434_v21 = vrot.slane %v5263_v0, 2 }
 0x2a1   : > { %v5271_v18 = vmax.f32 %v3555_v20, %v3599_v62  ;;  %v1221_v5 = vpop.f32.mrb[3].mxu0  ;;  %v1350_v23 = vpop.f32.mrb[3].mxu1 }
 0x2a2   : > { %v5273_v1 = vmax.f32 %v1221_v5, %v1350_v23  ;;  %v1397_v4 = vsel %vm5760_vm0, %v1395_v41, %v1396_v14  ;;  %v1436_v33 = vsel %vm995_vm1, %v1434_v21, %v1435_v31  ;;  %vm3961_vm0 = vmpackc.low %vm1670_vm4, %vm4579_vm2 }
 0x2a3   : > { %1410 = vrot.lane.b32.xlu0 %v1397_v4, %s4580_s22  ;;  %v1400_v6 = vrot.slane %v5271_v18, 1  ;;  %v1439_v59 = vrot.slane %v5271_v18, 2  ;;  %vm5767_vm2 = vmmov %vm5761_vm7 }
 0x2a4   : > { %v1398_v25 = vrot.slane %v5273_v1, 1  ;;  %v3558_v61 = vpop.f32.mrb[4].mxu0  ;;  %v3602_v2 = vpop.f32.mrb[4].mxu1  ;;  %v1437_v50 = vrot.slane %v5273_v1, 2 }
 0x2a5   : > { %v5278_v39 = vmax.f32 %v3558_v61, %v3602_v2  ;;  %v1231_v26 = vpop.f32.mrb[5].mxu0  ;;  %v1360_v34 = vpop.f32.mrb[5].mxu1 }
 0x2a6   : > { %v5283_v8 = vmax.f32 %v1231_v26, %v1360_v34  ;;  %v1399_v40 = vsel %vm5761_vm7, %v1396_v14, %v1398_v25  ;;  %v1401_v15 = vsel %vm5762_vm8, %v1398_v25, %v1400_v6  ;;  %v1438_v32 = vsel %vm995_vm1, %v1435_v31, %v1437_v50  ;;  %vm5768_vm7 = vmmov %vm5767_vm2 }
 0x2a7   : > { %1449 = vrot.lane.b32.xlu0 %v1436_v33, %s4581_s26  ;;  %1412 = vrot.lane.b32.xlu1 %v1399_v40, %s4580_s22  ;;  %v1404_v7 = vrot.slane %v5278_v39, 1  ;;  %v1440_v46 = vsel %vm995_vm1, %v1437_v50, %v1439_v59  ;;  %v1443_v11 = vrot.slane %v5278_v39, 2  ;;  %vm5769_vm8 = vmmov %vm5767_vm2 }
 0x2a8   : > { %v3561_v54 = vpop.f32.mrb[6].mxu0  ;;  %v3605_v55 = vpop.f32.mrb[6].mxu1  ;;  %v1402_v58 = vrot.slane %v5283_v8, 1  ;;  %v1441_v10 = vrot.slane %v5283_v8, 2 }
 0x2a9   : > { %v5289_v60 = vmax.f32 %v3561_v54, %v3605_v55  ;;  %v1241_v3 = vpop.f32.mrb[7].mxu0  ;;  %v1370_v16 = vpop.f32.mrb[7].mxu1 }
 0x2aa   : > { %v5292_v56 = vmax.f32 %v1241_v3, %v1370_v16  ;;  %v1403_v53 = vsel %vm5763_vm9, %v1400_v6, %v1402_v58  ;;  %v1405_v35 = vsel %vm5764_vm10, %v1402_v58, %v1404_v7  ;;  %v1442_v36 = vsel %vm995_vm1, %v1439_v59, %v1441_v10 }
 0x2ab   : > { %1414 = vrot.lane.b32.xlu0 %v1401_v15, %s4580_s22  ;;  %1451 = vrot.lane.b32.xlu1 %v1438_v32, %s4581_s26  ;;  %v1408_v37 = vrot.slane %v5289_v60, 1  ;;  %v1444_v42 = vsel %vm995_vm1, %v1441_v10, %v1443_v11  ;;  %v1447_v43 = vrot.slane %v5289_v60, 2  ;;  %vm1902_vm9 = vcmask 130048  }
 0x2ac   : > { %v1406_v38 = vrot.slane %v5292_v56, 1  ;;  %v1445_v44 = vrot.slane %v5292_v56, 2  ;;  %vm1910_vm10 = vcmask 195584  }
 0x2ae   : > { %v1409_v45 = vsel %vm5765_vm11, %v1406_v38, %v1408_v37  ;;  %v1407_v49 = vsel %vm5766_vm12, %v1404_v7, %v1406_v38  ;;  %v1448_v57 = vsel %vm995_vm1, %v1445_v44, %v1447_v43  ;;  %v1446_v51 = vsel %vm995_vm1, %v1443_v11, %v1445_v44  ;;  %vm5770_vm12 = vmmov %vm5767_vm2 }
 0x2af   : > { %1453 = vrot.lane.b32.xlu0 %v1440_v46, %s4581_s26  ;;  %1416 = vrot.lane.b32.xlu1 %v1403_v53, %s4580_s22  ;;  %vm2030_vm11 = vcmask 228352  }
 0x2b3   : > { %1418 = vrot.lane.b32.xlu0 %v1405_v35, %s4580_s22  ;;  %1455 = vrot.lane.b32.xlu1 %v1442_v36, %s4581_s26 }
 0x2b7   : > { %1457 = vrot.lane.b32.xlu0 %v1444_v42, %s4581_s26  ;;  %1424 = vrot.lane.b32.xlu1 %v1408_v37, %s4580_s22 }
 0x2bb   : > { %1422 = vrot.lane.b32.xlu0 %v1409_v45, %s4580_s22  ;;  %1420 = vrot.lane.b32.xlu1 %v1407_v49, %s4580_s22 }
 0x2bf   : > { %1461 = vrot.lane.b32.xlu0 %v1448_v57, %s4581_s26  ;;  %1459 = vrot.lane.b32.xlu1 %v1446_v51, %s4581_s26 }
 0x2c3   : > { %1463 = vrot.lane.b32.xlu1 %v1447_v43, %s4581_s26 }
 0x315   : > { %v1411_v63 = vpop.permute.xlu0 %1410 }
 0x316   : > { %v1474_v19 = vsel %vm1473_vm13, %v5263_v0, %v1411_v63 }
 0x319   : > { %v1450_v22 = vpop.permute.xlu0 %1449  ;;  %v1413_v52 = vpop.permute.xlu1 %1412 }
 0x31a   : > { %v1483_v14 = vsel %vm1482_vm14, %v1474_v19, %v1450_v22  ;;  %v1475_v41 = vsel %vm1473_vm13, %v5259_v12, %v1413_v52 }
 0x31b   : > { %3610 = vmatprep.mubr.msk.f32.mxu1 %vm1493_vm15, %v1483_v14 }
 0x31d   : > { %v1415_v20 = vpop.permute.xlu0 %1414  ;;  %v1452_v62 = vpop.permute.xlu1 %1451 }
 0x31e   : > { %v1484_v31 = vsel %vm1482_vm14, %v1475_v41, %v1452_v62  ;;  %v1476_v21 = vsel %vm1473_vm13, %v5273_v1, %v1415_v20 }
 0x31f   : > { %3611 = vmatmul.mubr.msk.f32.vlgmr.msra.gmra.mrb[8].mxu1 %vm1493_vm15, %v1484_v31 }
 0x321   : > { %v1454_v5 = vpop.permute.xlu0 %1453  ;;  %v1417_v0 = vpop.permute.xlu1 %1416 }
 0x322   : > { %v1485_v23 = vsel %vm1482_vm14, %v1476_v21, %v1454_v5  ;;  %v1477_v4 = vsel %vm1473_vm13, %v5271_v18, %v1417_v0 }
 0x323   : > { %3613 = vmatprep.mubr.msk.f32.mxu1 %vm1493_vm15, %v1485_v23 }
 0x325   : > { %v1419_v25 = vpop.permute.xlu0 %1418  ;;  %v1456_v12 = vpop.permute.xlu1 %1455 }
 0x326   : > { %v1486_v61 = vsel %vm1482_vm14, %v1477_v4, %v1456_v12  ;;  %v1478_v2 = vsel %vm1473_vm13, %v5283_v8, %v1419_v25 }
 0x327   : > { %3614 = vmatmul.mubr.msk.f32.gmra.mrb[10].mxu1 %vm1493_vm15, %v1486_v61  ;;  %v1907_v61 = vld [vmem:[%s5675_s5] sm:$0xff] }
 0x329   : > { %v1458_v26 = vpop.permute.xlu0 %1457  ;;  %v1425_v1 = vpop.permute.xlu1 %1424 }
 0x32a   : > { %v1487_v34 = vsel %vm1482_vm14, %v1478_v2, %v1458_v26  ;;  %v1481_v59 = vsel %vm1473_vm13, %v5289_v60, %v1425_v1  ;;  %v1908_v2 = vld [vmem:[%s5675_s5 + $0x8] sm:$0xff] }
 0x32b   : > { %3616 = vmatprep.mubr.msk.f32.mxu1 %vm1493_vm15, %v1487_v34  ;;  %v3984_v26 = vpack.c.bf16 %v1908_v2, %v1907_v61 }
 0x32d   : > { %v1423_v33 = vpop.permute.xlu0 %1422  ;;  %v1421_v6 = vpop.permute.xlu1 %1420 }
 0x32e   : > { %v1480_v18 = vsel %vm1473_vm13, %v5292_v56, %v1423_v33  ;;  %v1479_v50 = vsel %vm1473_vm13, %v5278_v39, %v1421_v6  ;;  %v3289_v39 = vld [vmem:[#allocation8] ss:$0 sm:$0xff]  ;;  %v3290_v56 = vld [vmem:[#allocation8 + $0x1] ss:$0 sm:$0xff] }
 0x331   : > { %v1462_v40 = vpop.permute.xlu0 %1461  ;;  %v1460_v54 = vpop.permute.xlu1 %1459 }
 0x332   : > { %v1489_v55 = vsel %vm1482_vm14, %v1480_v18, %v1462_v40  ;;  %v1488_v8 = vsel %vm1482_vm14, %v1479_v50, %v1460_v54 }
 0x333   : > { %3617 = vmatmul.mubr.msk.f32.gmra.mrb[12].mxu1 %vm1493_vm15, %v1488_v8 }
 0x334   : > { %3619 = vmatprep.mubr.msk.f32.mxu1 %vm1493_vm15, %v1489_v55 }
 0x335   : > { %v1464_v3 = vpop.permute.xlu1 %1463 }
 0x336   : > { %v1490_v16 = vsel %vm1482_vm14, %v1481_v59, %v1464_v3 }
 0x337   : > { %3620 = vmatmul.mubr.msk.f32.gmra.mrb[14].mxu1 %vm1493_vm15, %v1490_v16 }
 0x338   : > { %3638 = vmatprep.mubr.msk.f32.mxu1 %vm1661_vm3, %v4964_v29 }
 0x3f2   : > { %v3612_v58 = vpop.f32.mrb[8].mxu1 }
 0x3f3   : > { %v1633_v15 = vmul.f32 %v3612_v58, %v3289_v39  ;;  %v1588_v32 = vpop.f32.mrb[9].mxu1 }
 0x3f4   : > { %v1632_v7 = vmul.f32 %v3289_v39, %v1588_v32 }
 0x3f5   : > { %v1646_v10 = vadd.f32 %v3290_v56, %v1633_v15 }
 0x3f6   : > { %v1645_v60 = vadd.f32 %v3290_v56, %v1632_v7 }
 0x3f7   : > { %v1654_v46 = vmax.f32 %v1646_v10, 0.0 }
 0x3f8   : > { %v1653_v53 = vmax.f32 %v1645_v60, 0.0 }
 0x3fa   : > { %v3948_v11 = vpack.c.bf16 %v1654_v46, %v1653_v53  ;;  %v3615_v35 = vpop.f32.mrb[10].mxu1 }
 0x3fb   : > { %v1635_v36 = vmul.f32 %v3615_v35, %v3289_v39  ;;  %v1598_v37 = vpop.f32.mrb[11].mxu1 }
 0x3fc   : > { %v1634_v38 = vmul.f32 %v3289_v39, %v1598_v37  ;;  %3949 = vmatprep.subr.bf16.mxu1 %v3948_v11  ;;  %3967 = vmatprep.subr.bf16.mxu0 %v3948_v11 }
 0x3fd   : > { %v1648_v42 = vadd.f32 %v3290_v56, %v1635_v36  ;;  %3951 = vmatpush3.bf16.msra.mxu1 %v3948_v11  ;;  %3969 = vmatpush3.bf16.msra.mxu0 %v3948_v11 }
 0x3fe   : > { %v1647_v43 = vadd.f32 %v3290_v56, %v1634_v38 }
 0x3ff   : > { %v1656_v44 = vmax.f32 %v1648_v42, 0.0 }
 0x400   : > { %v1655_v45 = vmax.f32 %v1647_v43, 0.0 }
 0x402   : > { %v3952_v49 = vpack.c.bf16 %v1656_v44, %v1655_v45 }
 0x404   : > { %3953 = vmatprep.subr.bf16.mxu1 %v3952_v49  ;;  %3971 = vmatprep.subr.bf16.mxu0 %v3952_v49 }
 0x405   : > { %3955 = vmatpush3.bf16.msra.mxu1 %v3952_v49  ;;  %3973 = vmatpush3.bf16.msra.mxu0 %v3952_v49 }
 0x406   : > { %v3618_v57 = vpop.f32.mrb[12].mxu1 }
 0x407   : > { %v1637_v51 = vmul.f32 %v3618_v57, %v3289_v39  ;;  %v1608_v63 = vpop.f32.mrb[13].mxu1 }
 0x408   : > { %v1636_v19 = vmul.f32 %v3289_v39, %v1608_v63 }
 0x409   : > { %v1650_v22 = vadd.f32 %v3290_v56, %v1637_v51 }
 0x40a   : > { %v1649_v52 = vadd.f32 %v3290_v56, %v1636_v19  ;;  %v3621_v14 = vpop.f32.mrb[14].mxu1 }
 0x40b   : > { %v1658_v41 = vmax.f32 %v1650_v22, 0.0  ;;  %v1639_v20 = vmul.f32 %v3621_v14, %v3289_v39  ;;  %v1618_v62 = vpop.f32.mrb[15].mxu1  ;;  %v3305_v14 = vld [vmem:[#allocation10] ss:$0 sm:$0xff] }
 0x40c   : > { %v1657_v31 = vmax.f32 %v1649_v52, 0.0  ;;  %v1638_v21 = vmul.f32 %v3289_v39, %v1618_v62 }
 0x40d   : > { %v1652_v5 = vadd.f32 %v3290_v56, %v1639_v20  ;;  %v3306_v20 = vld [vmem:[#allocation10 + $0x1] ss:$0 sm:$0xff] }
 0x40e   : > { %v3956_v0 = vpack.c.bf16 %v1658_v41, %v1657_v31  ;;  %v1651_v23 = vadd.f32 %v3290_v56, %v1638_v21 }
 0x40f   : > { %v1660_v4 = vmax.f32 %v1652_v5, 0.0 }
 0x410   : > { %v1659_v25 = vmax.f32 %v1651_v23, 0.0  ;;  %3957 = vmatprep.subr.bf16.mxu1 %v3956_v0  ;;  %3975 = vmatprep.subr.bf16.mxu0 %v3956_v0 }
 0x411   : > { %3959 = vmatpush3.bf16.msra.mxu1 %v3956_v0  ;;  %3977 = vmatpush3.bf16.msra.mxu0 %v3956_v0 }
 0x412   : > { %v3960_v12 = vpack.c.bf16 %v1660_v4, %v1659_v25 }
 0x414   : > { %3962 = vmatprep.subr.msk.bf16.mxu1 %vm3961_vm0, %v3960_v12  ;;  %3980 = vmatprep.subr.msk.bf16.mxu0 %vm3961_vm0, %v3960_v12 }
 0x415   : > { %3965 = vmatpush3.bf16.msk.msra.mxu1 %vm3961_vm0, %v3960_v12  ;;  %3983 = vmatpush3.bf16.msk.msra.mxu0 %vm3961_vm0, %v3960_v12 }
 0x416   : > { %3985 = vmatprep.subr.bf16.mxu0 %v3984_v26 }
 0x418   : > { %3639 = vmatmul.mubr.msk.f32.vlgmr.msra.gmra.mrb[16].mxu1 %vm1661_vm3, %v5175_v9  ;;  %3661 = vmatmul.mubr.msk.f32.vlgmr.msra.gmra.mrb[8].mxu0 %vm1661_vm3, %v5181_v13 }
 0x419   : > { %3641 = vmatprep.mubr.msk.f32.mxu1 %vm1661_vm3, %v5186_v47  ;;  %3663 = vmatprep.mubr.msk.f32.mxu0 %vm1661_vm3, %v5192_v17 }
 0x41a   : > { %3987 = vmatpush3.bf16.msra.mxu0 %v3984_v26 }
 0x41c   : > { %3642 = vmatmul.mubr.msk.f32.gmra.mrb[18].mxu1 %vm1661_vm3, %v5205_v24  ;;  %3664 = vmatmul.mubr.msk.f32.gmra.mrb[10].mxu0 %vm1661_vm3, %v5211_v27  ;;  %v1909_v24 = vld [vmem:[%s5675_s5 + $0x10] sm:$0xff]  ;;  %vm2225_vm3 = vcmask 392192  }
 0x41d   : > { %3670 = vmatprep.subr.mxu0 %v1909_v24  ;;  %3686 = vmatprep.mubr.msk.f32.mxu1 %vm2030_vm11, %v4964_v29 }
 0x41e   : > { %3671 = vmatpush3.msra.mxu0 %v1909_v24  ;;  %v2220_v24 = vld [vmem:[#allocation11 + $0x8] sm:$0xff] }
 0x4eb   : > { %v3640_v1 = vpop.f32.mrb[16].mxu1  ;;  %v3662_v47 = vpop.f32.mrb[8].mxu0 }
 0x4ec   : > { %v1853_v34 = vmax.f32 %v3640_v1, %v3662_v47  ;;  %v1740_v33 = vpop.f32.mrb[17].mxu1  ;;  %v1833_v17 = vpop.f32.mrb[9].mxu0 }
 0x4ed   : > { %v1852_v6 = vmax.f32 %v1740_v33, %v1833_v17 }
 0x4ee   : > { %v1861_v27 = vrot.slane %v1853_v34, 1  ;;  %v1880_v59 = vrot.slane %v1853_v34, 2 }
 0x4ef   : > { %v1860_v18 = vrot.slane %v1852_v6, 1  ;;  %v3643_v50 = vpop.f32.mrb[18].mxu1  ;;  %v3665_v40 = vpop.f32.mrb[10].mxu0  ;;  %v1879_v3 = vrot.slane %v1852_v6, 2 }
 0x4f0   : > { %v1855_v54 = vmax.f32 %v3643_v50, %v3665_v40  ;;  %v1750_v55 = vpop.f32.mrb[19].mxu1  ;;  %v1843_v8 = vpop.f32.mrb[11].mxu0  ;;  %v2222_v50 = vld [vmem:[#allocation11 + $0x18] sm:$0xff] }
 0x4f1   : > { %v1854_v16 = vmax.f32 %v1750_v55, %v1843_v8  ;;  %v1862_v39 = vsel %vm5767_vm2, %v1860_v18, %v1861_v27  ;;  %v1881_v15 = vsel %vm995_vm1, %v1879_v3, %v1880_v59  ;;  %v2221_v18 = vld [vmem:[#allocation11 + $0x10] sm:$0xff]  ;;  %v2224_v55 = vld [vmem:[#allocation11 + $0x28] sm:$0xff] }
 0x4f2   : > { %1867 = vrot.lane.b32.xlu0 %v1862_v39, %s4581_s26  ;;  %v1865_v58 = vrot.slane %v1855_v54, 1  ;;  %v1884_v10 = vrot.slane %v1855_v54, 2  ;;  %v4012_v40 = vpack.c.bf16 %v2222_v50, %v2221_v18 }
 0x4f3   : > { %v1863_v56 = vrot.slane %v1854_v16, 1  ;;  %v1882_v32 = vrot.slane %v1854_v16, 2 }
 0x4f4   : > { %1873 = vrot.lane.b32.xlu1 %v1865_v58, %s4581_s26 }
 0x4f5   : > { %v1864_v7 = vsel %vm5768_vm7, %v1861_v27, %v1863_v56  ;;  %v1866_v60 = vsel %vm5769_vm8, %v1863_v56, %v1865_v58  ;;  %v1883_v46 = vsel %vm995_vm1, %v1880_v59, %v1882_v32  ;;  %v1885_v53 = vsel %vm995_vm1, %v1882_v32, %v1884_v10 }
 0x4f6   : > { %1886 = vrot.lane.b32.xlu0 %v1881_v15, %s4582_s27 }
 0x4f8   : > { %1869 = vrot.lane.b32.xlu1 %v1864_v7, %s4581_s26 }
 0x4fa   : > { %1871 = vrot.lane.b32.xlu0 %v1866_v60, %s4581_s26 }
 0x4fc   : > { %1888 = vrot.lane.b32.xlu1 %v1883_v46, %s4582_s27 }
 0x4fe   : > { %1890 = vrot.lane.b32.xlu0 %v1885_v53, %s4582_s27 }
 0x500   : > { %1892 = vrot.lane.b32.xlu1 %v1884_v10, %s4582_s27 }
 0x564   : > { %v1868_v11 = vpop.permute.xlu0 %1867 }
 0x565   : > { %v1898_v36 = vsel %vm1482_vm14, %v1852_v6, %v1868_v11  ;;  %v2219_v6 = vld [vmem:[#allocation11] sm:$0xff] }
 0x566   : > { %v1874_v35 = vpop.permute.xlu1 %1873  ;;  %v4008_v27 = vpack.c.bf16 %v2220_v24, %v2219_v6 }
 0x567   : > { %v1901_v19 = vsel %vm1482_vm14, %v1855_v54, %v1874_v35  ;;  %v2223_v54 = vld [vmem:[#allocation11 + $0x20] sm:$0xff] }
 0x568   : > { %v1887_v37 = vpop.permute.xlu0 %1886  ;;  %v4016_v8 = vpack.c.bf16 %v2224_v55, %v2223_v54 }
 0x569   : > { %v1903_v38 = vsel %vm1902_vm9, %v1898_v36, %v1887_v37 }
 0x56a   : > { %3672 = vmatprep.mubr.msk.f32.mxu0 %vm1910_vm10, %v1903_v38  ;;  %v1870_v42 = vpop.permute.xlu1 %1869 }
 0x56b   : > { %v1899_v44 = vsel %vm1482_vm14, %v1853_v34, %v1870_v42  ;;  %v4584_v42 = vmov 0.0|0.0  }
 0x56c   : > { %v1872_v43 = vpop.permute.xlu0 %1871 }
 0x56d   : > { %v1900_v57 = vsel %vm1482_vm14, %v1854_v16, %v1872_v43  ;;  %vm2216_vm14 = vcmask 261120   ;;  %v3315_v43 = vld [vmem:[%s5678_s8] ss:$0 sm:$0xff] }
 0x56e   : > { %v1889_v45 = vpop.permute.xlu1 %1888 }
 0x56f   : > { %v1904_v49 = vsel %vm1902_vm9, %v1899_v44, %v1889_v45  ;;  %v3316_v45 = vld [vmem:[%s5678_s8 + $0x1] ss:$0 sm:$0xff] }
 0x570   : > { %v1891_v51 = vpop.permute.xlu0 %1890  ;;  %3673 = vmatmul.mubr.msk.f32.vlgmr.msra.gmra.mrb[12].mxu0 %vm1910_vm10, %v1904_v49 }
 0x571   : > { %v1905_v63 = vsel %vm1902_vm9, %v1900_v57, %v1891_v51 }
 0x572   : > { %3675 = vmatprep.mubr.msk.f32.mxu0 %vm1910_vm10, %v1905_v63  ;;  %v1893_v22 = vpop.permute.xlu1 %1892 }
 0x573   : > { %v1906_v52 = vsel %vm1902_vm9, %v1901_v19, %v1893_v22 }
 0x574   : > { %3676 = vmatmul.mubr.msk.f32.gmra.mrb[14].mxu0 %vm1910_vm10, %v1906_v52 }
 0x575   : > { %3697 = vmatprep.mubr.msk.f32.mxu0 %vm2030_vm11, %v4967_v30 }
 0x643   : > { %v3674_v41 = vpop.f32.mrb[12].mxu0 }
 0x644   : > { %v2014_v62 = vmul.f32 %v3674_v41, %v3305_v14  ;;  %v1989_v31 = vpop.f32.mrb[13].mxu0  ;;  %v2483_v41 = vld [vmem:[#allocation13] sm:$0xff] }
 0x645   : > { %v2013_v21 = vmul.f32 %v3305_v14, %v1989_v31 }
 0x646   : > { %v2023_v5 = vadd.f32 %v3306_v20, %v2014_v62  ;;  %v2485_v62 = vld [vmem:[#allocation13 + $0x10] sm:$0xff] }
 0x647   : > { %v2022_v0 = vadd.f32 %v3306_v20, %v2013_v21  ;;  %v3677_v23 = vpop.f32.mrb[14].mxu0  ;;  %v2486_v21 = vld [vmem:[#allocation13 + $0x18] sm:$0xff] }
 0x648   : > { %v2027_v4 = vmax.f32 %v2023_v5, 0.0  ;;  %v2016_v25 = vmul.f32 %v3677_v23, %v3305_v14  ;;  %v1999_v12 = vpop.f32.mrb[15].mxu0  ;;  %v4032_v5 = vpack.c.bf16 %v2486_v21, %v2485_v62  ;;  %v2907_v62 = vld [vmem:[%s5683_s13 + $0x58] sm:$0xff]  ;;  %v2908_v21 = vld [vmem:[%s5683_s13 + $0x60] sm:$0xff] }
 0x649   : > { %v2026_v61 = vmax.f32 %v2022_v0, 0.0  ;;  %v2015_v2 = vmul.f32 %v3305_v14, %v1999_v12  ;;  %v2488_v0 = vld [vmem:[#allocation13 + $0x28] sm:$0xff] }
 0x64a   : > { %v2025_v26 = vadd.f32 %v3306_v20, %v2016_v25  ;;  %v4035_v23 = vpack.c.bf16 %v2488_v0, %v2487_v48  ;;  %v2490_v25 = vld [vmem:[#allocation13 + $0x38] sm:$0xff] }
 0x64b   : > { %v3988_v1 = vpack.c.bf16 %v2027_v4, %v2026_v61  ;;  %v2024_v47 = vadd.f32 %v3306_v20, %v2015_v2  ;;  %v2484_v20 = vld [vmem:[#allocation13 + $0x8] sm:$0xff]  ;;  %v2489_v4 = vld [vmem:[#allocation13 + $0x30] sm:$0xff]  ;;  %v2491_v61 = vld [vmem:[#allocation13 + $0x40] sm:$0xff] }
 0x64c   : > { %v2029_v34 = vmax.f32 %v2025_v26, 0.0  ;;  %v4029_v31 = vpack.c.bf16 %v2484_v20, %v2483_v41  ;;  %v4038_v12 = vpack.c.bf16 %v2490_v25, %v2489_v4  ;;  %v2492_v2 = vld [vmem:[#allocation13 + $0x48] sm:$0xff]  ;;  %v2814_v4 = vld [vmem:[#allocation14 + $0x40] sm:$0xff] }
 0x64d   : > { %v2028_v33 = vmax.f32 %v2024_v47, 0.0  ;;  %3989 = vmatprep.subr.bf16.mxu1 %v3988_v1  ;;  %3999 = vmatprep.subr.bf16.mxu0 %v3988_v1  ;;  %v4041_v26 = vpack.c.bf16 %v2492_v2, %v2491_v61  ;;  %v2494_v47 = vld [vmem:[#allocation13 + $0x58] sm:$0xff]  ;;  %v2906_v20 = vld [vmem:[%s5683_s13 + $0x50] sm:$0xff] }
 0x64e   : > { %3991 = vmatpush3.bf16.msra.mxu1 %v3988_v1  ;;  %4001 = vmatpush3.bf16.msra.mxu0 %v3988_v1  ;;  %v2493_v1 = vld [vmem:[#allocation13 + $0x50] sm:$0xff]  ;;  %v2815_v25 = vld [vmem:[#allocation14 + $0x48] sm:$0xff] }
 0x64f   : > { %v3992_v17 = vpack.c.bf16 %v2029_v34, %v2028_v33  ;;  %v4044_v34 = vpack.c.bf16 %v2494_v47, %v2493_v1  ;;  %v4059_v61 = vpack.c.bf16 %v2815_v25, %v2814_v4  ;;  %v2816_v1 = vld [vmem:[#allocation14 + $0x50] sm:$0xff]  ;;  %v2817_v47 = vld [vmem:[#allocation14 + $0x58] sm:$0xff] }
 0x651   : > { %3994 = vmatprep.subr.msk.bf16.mxu1 %vm5255_vm6, %v3992_v17  ;;  %4004 = vmatprep.subr.msk.bf16.mxu0 %vm5255_vm6, %v3992_v17 }
 0x652   : > { %3997 = vmatpush3.bf16.msk.msra.mxu1 %vm5255_vm6, %v3992_v17  ;;  %4007 = vmatpush3.bf16.msk.msra.mxu0 %vm5255_vm6, %v3992_v17 }
 0x653   : > { %4009 = vmatprep.subr.bf16.mxu1 %v4008_v27  ;;  %4020 = vmatprep.subr.bf16.mxu0 %v4584_v42 }
 0x655   : > { %3687 = vmatmul.mubr.msk.f32.vlgmr.msra.gmra.mrb[20].mxu1 %vm2030_vm11, %v5175_v9  ;;  %3698 = vmatmul.mubr.msk.f32.vlgmr.msra.gmra.mrb[16].mxu0 %vm2030_vm11, %v5181_v13 }
 0x656   : > { %4011 = vmatpush3.bf16.msra.mxu1 %v4008_v27 }
 0x657   : > { %4013 = vmatprep.subr.bf16.mxu1 %v4012_v40 }
 0x65a   : > { %4015 = vmatpush3.bf16.msra.mxu1 %v4012_v40 }
 0x65b   : > { %4017 = vmatprep.subr.bf16.mxu1 %v4016_v8 }
 0x65e   : > { %4019 = vmatpush3.bf16.msra.mxu1 %v4016_v8 }
 0x65f   : > { %4028 = vmatprep.subr.bf16.mxu1 %v4584_v42 }
 0x728   : > { %v3688_v59 = vpop.f32.mrb[20].mxu1  ;;  %v3699_v9 = vpop.f32.mrb[16].mxu0 }
 0x729   : > { %v2193_v3 = vmax.f32 %v3688_v59, %v3699_v9  ;;  %v2104_v16 = vpop.f32.mrb[21].mxu1  ;;  %v2183_v13 = vpop.f32.mrb[17].mxu0  ;;  %v3322_v59 = vld [vmem:[%s5680_s10] ss:$0 sm:$0xff] }
 0x72a   : > { %v2192_v39 = vmax.f32 %v2104_v16, %v2183_v13 }
 0x72b   : > { %v2197_v58 = vrot.slane %v2193_v3, 1  ;;  %v2206_v7 = vrot.slane %v2193_v3, 2 }
 0x72c   : > { %v2196_v56 = vrot.slane %v2192_v39, 1  ;;  %v2205_v15 = vrot.slane %v2192_v39, 2 }
 0x72d   : > { %2201 = vrot.lane.b32.xlu1 %v2197_v58, %s4582_s27 }
 0x72e   : > { %v2198_v32 = vsel %vm5770_vm12, %v2196_v56, %v2197_v58  ;;  %v2207_v10 = vsel %vm995_vm1, %v2205_v15, %v2206_v7  ;;  %vm4585_vm1 = vmmov 0   ;;  %v2731_v56 = vld [vmem:[#allocation14] sm:$0xff]  ;;  %v2732_v15 = vld [vmem:[#allocation14 + $0x8] sm:$0xff] }
 0x72f   : > { %2199 = vrot.lane.b32.xlu0 %v2198_v32, %s4582_s27  ;;  %3719 = vmatprep.mubr.msk.f32.mxu0 %vm4585_vm1, %v4578_v28  ;;  %v4047_v32 = vpack.c.bf16 %v2732_v15, %v2731_v56  ;;  %v2989_v56 = vld [vmem:[%s5685_s15 + $0x30] sm:$0xff]  ;;  %v2990_v15 = vld [vmem:[%s5685_s15 + $0x38] sm:$0xff]  ;;  %s3330_s27 = sshll.u32 %s4699_s28, 4  ;;  %s4587_s28 = smov [#allocation16]  }
 0x730   : > { %s4485_s22 = sshll.u32 %s4587_s28, 4  ;;  %s4486_s22 = int_to_ptr.vmem [resolvable:$false] %s4485_s22 }
 0x731   : > { %2210 = vrot.lane.b32.xlu1 %v2206_v7, %s4583_s24  ;;  %v2733_v7 = vld [vmem:[#allocation14 + $0x10] sm:$0xff]  ;;  %s4487_s26 = scalar_lea.vmem %s4486_s22, 32 }
 0x733   : > { %2208 = vrot.lane.b32.xlu0 %v2207_v10, %s4583_s24  ;;  %v2734_v10 = vld [vmem:[#allocation14 + $0x18] sm:$0xff] }
 0x79f   : > { %v2202_v60 = vpop.permute.xlu1 %2201 }
 0x7a0   : > { %v2215_v36 = vsel %vm1902_vm9, %v2193_v3, %v2202_v60  ;;  %v3323_v3 = vld [vmem:[%s5680_s10 + $0x1] ss:$0 sm:$0xff]  ;;  %v4050_v60 = vpack.c.bf16 %v2734_v10, %v2733_v7  ;;  %v2992_v10 = vld [vmem:[%s5685_s15 + $0x48] sm:$0xff] }
 0x7a1   : > { %v2200_v46 = vpop.permute.xlu0 %2199  ;;  %v2991_v7 = vld [vmem:[%s5685_s15 + $0x40] sm:$0xff] }
 0x7a2   : > { %v2214_v11 = vsel %vm1902_vm9, %v2192_v39, %v2200_v46  ;;  %v2736_v46 = vld [vmem:[#allocation14 + $0x28] sm:$0xff] }
 0x7a3   : > { %v2211_v53 = vpop.permute.xlu1 %2210 }
 0x7a4   : > { %v2218_v38 = vsel %vm2216_vm14, %v2215_v36, %v2211_v53 }
 0x7a5   : > { %v2209_v35 = vpop.permute.xlu0 %2208 }
 0x7a6   : > { %v2217_v37 = vsel %vm2216_vm14, %v2214_v11, %v2209_v35  ;;  %v2737_v11 = vld [vmem:[#allocation14 + $0x30] sm:$0xff]  ;;  %v2738_v35 = vld [vmem:[#allocation14 + $0x38] sm:$0xff] }
 0x7a7   : > { %3712 = vmatprep.mubr.msk.f32.mxu1 %vm2225_vm3, %v2217_v37  ;;  %v4056_v36 = vpack.c.bf16 %v2738_v35, %v2737_v11  ;;  %v2897_v37 = vld [vmem:[%s5683_s13 + $0x8] sm:$0xff]  ;;  %v2995_v11 = vld [vmem:[%s5685_s15 + $0x60] sm:$0xff] }
 0x7a8   : > { %3713 = vmatmul.mubr.msk.f32.vlgmr.msra.gmra.mrb[22].mxu1 %vm2225_vm3, %v2218_v38  ;;  %v2898_v38 = vld [vmem:[%s5683_s13 + $0x10] sm:$0xff]  ;;  %v2996_v35 = vld [vmem:[%s5685_s15 + $0x68] sm:$0xff] }
 0x7a9   : > { %3753 = vmatprep.mubr.msk.f32.mxu1 %vm4585_vm1, %v4578_v28  ;;  %4030 = vmatpush3.bf16.msra.mxu1 %v4029_v31  ;;  %v4086_v31 = vpack.c.bf16 %v2907_v62, %v2906_v20 }
 0x7aa   : > { %4031 = vmatprep.subr.bf16.mxu1 %v4584_v42 }
 0x7ad   : > { %4033 = vmatpush3.bf16.msra.mxu1 %v4032_v5  ;;  %v2909_v5 = vld [vmem:[%s5683_s13 + $0x68] sm:$0xff] }
 0x7ae   : > { %4034 = vmatprep.subr.bf16.mxu1 %v4584_v42  ;;  %v4089_v48 = vpack.c.bf16 %v2909_v5, %v2908_v21 }
 0x7b1   : > { %4036 = vmatpush3.bf16.msra.mxu1 %v4035_v23 }
 0x7b2   : > { %4037 = vmatprep.subr.bf16.mxu1 %v4584_v42 }
 0x7b5   : > { %4039 = vmatpush3.bf16.msra.mxu1 %v4038_v12 }
 0x7b6   : > { %4040 = vmatprep.subr.bf16.mxu1 %v4584_v42 }
 0x7b9   : > { %4042 = vmatpush3.bf16.msra.mxu1 %v4041_v26 }
 0x7ba   : > { %4043 = vmatprep.subr.bf16.mxu1 %v4584_v42 }
 0x7bd   : > { %4045 = vmatpush3.bf16.msra.mxu1 %v4044_v34  ;;  %v4062_v34 = vpack.c.bf16 %v2817_v47, %v2816_v1 }
 0x7be   : > { %4070 = vmatprep.subr.bf16.mxu1 %v4584_v42 }
 0x87b   : > { %v3714_v44 = vpop.f32.mrb[22].mxu1 }
 0x87c   : > { %v2313_v49 = vmul.f32 %v3714_v44, %v3315_v43  ;;  %v2298_v57 = vpop.f32.mrb[23].mxu1  ;;  %v2899_v44 = vld [vmem:[%s5683_s13 + $0x18] sm:$0xff] }
 0x87d   : > { %v2312_v51 = vmul.f32 %v3315_v43, %v2298_v57  ;;  %v2901_v57 = vld [vmem:[%s5683_s13 + $0x28] sm:$0xff] }
 0x87e   : > { %v2320_v63 = vadd.f32 %v3316_v45, %v2313_v49  ;;  %v2900_v49 = vld [vmem:[%s5683_s13 + $0x20] sm:$0xff] }
 0x87f   : > { %v2319_v19 = vadd.f32 %v3316_v45, %v2312_v51  ;;  %v4074_v45 = vpack.c.bf16 %v2899_v44, %v2898_v38  ;;  %v4077_v51 = vpack.c.bf16 %v2901_v57, %v2900_v49  ;;  %v2997_v44 = vld [vmem:[%s5685_s15 + $0x70] sm:$0xff] }
 0x880   : > { %v2322_v22 = vmax.f32 %v2320_v63, 0.0  ;;  %v2902_v63 = vld [vmem:[%s5683_s13 + $0x30] sm:$0xff] }
 0x881   : > { %v2321_v52 = vmax.f32 %v2319_v19, 0.0  ;;  %v2903_v19 = vld [vmem:[%s5683_s13 + $0x38] sm:$0xff] }
 0x883   : > { %v4021_v14 = vpack.c.bf16 %v2322_v22, %v2321_v52  ;;  %v4080_v22 = vpack.c.bf16 %v2903_v19, %v2902_v63  ;;  %v2904_v52 = vld [vmem:[%s5683_s13 + $0x40] sm:$0xff] }
 0x884   : > { %v2999_v19 = vld [vmem:[%s5773_s0] sm:$0x1] }
 0x885   : > { %4023 = vmatpush3.bf16.msk.msra.mxu0 %vm5255_vm6, %v4021_v14 }
 0x886   : > { %4024 = vmatprep.subr.bf16.mxu0 %v4584_v42 }
 0x888   : > { %3720 = vmatmul.mubr.msk.f32.vlgmr.msra.gmra.mrb[18].mxu0 %vm1493_vm15, %v4964_v29 }
 0x889   : > { %4027 = vmatpush3.bf16.msk.msra.mxu0 %vm5255_vm6, %v4021_v14  ;;  %3726 = vmatprep.mubr.msk.f32.mxu0 %vm4585_vm1, %v4578_v28  ;;  %vm2481_vm6 = vcmask 523264   ;;  %v2905_v14 = vld [vmem:[%s5683_s13 + $0x48] sm:$0xff] }
 0x88a   : > { %3756 = vmatprep.subr.mxu0 %v4578_v28  ;;  %v4083_v41 = vpack.c.bf16 %v2905_v14, %v2904_v52 }
 0x88c   : > { %3727 = vmatmul.mubr.msk.f32.vlgmr.msra.gmra.mrb[20].mxu0 %vm1493_vm15, %v4967_v30  ;;  %vm2495_vm15 = vcmask 785408  }
 0x88d   : > { %3758 = vmatprep.mubr.msk.f32.mxu0 %vm4585_vm1, %v4578_v28 }
 0x95b   : > { %v2394_v33 = vpop.f32.mrb[18].mxu0 }
 0x95c   : > { %v3721_v17 = vpop.f32.mrb[19].mxu0 }
 0x95d   : > { %v2819_v17 = vld [vmem:[#allocation14 + $0x68] sm:$0xff] }
 0x95f   : > { %v2466_v6 = vpop.f32.mrb[20].mxu0 }
 0x960   : > { %v2470_v24 = vmax.f32 %v2394_v33, %v2466_v6  ;;  %v3728_v27 = vpop.f32.mrb[21].mxu0  ;;  %v2818_v33 = vld [vmem:[#allocation14 + $0x60] sm:$0xff] }
 0x961   : > { %v4065_v6 = vpack.c.bf16 %v2819_v17, %v2818_v33  ;;  %v2821_v27 = vld [vmem:[#allocation14 + $0x78] sm:$0xff] }
 0x962   : > { %v2476_v18 = vrot.slane %v2470_v24, 2  ;;  %v2472_v50 = vrot.slane %v2470_v24, 1 }
 0x964   : > { %2477 = vrot.lane.b32.xlu1 %v2476_v18, %s4586_s30  ;;  %2473 = vrot.lane.b32.xlu0 %v2472_v50, %s4583_s24  ;;  %s651_s24 = scalar_lea.vmem [#allocation16], %s650_s17  ;;  %s5628_s30 = scalar_lea.hbm %s5774_s29, %s3330_s27 }
 0x965   : > { %s3085_s14 = sshll.u32 %s651_s24, 4  ;;  %s5630_s14 = int_to_ptr.vmem [resolvable:$true] %s3085_s14 }
 0x966   : > { %s4481_s23 = scalar_lea.vmem %s5630_s14, 16  ;;  %p4488_p1 = scmp.lt.s32.totalorder %s5630_s14, %s4486_s22 }
 0x967   : > { %p4482_p8 = scmp.ne.s32.totalorder %s5630_s14, %s4481_s23  ;;  %p4489_p6 = scmp.lt.s32.totalorder %s4487_s26, %s4481_s23 }
 0x969   : > { %p4483_p13 = pnand %p4482_p8, %p5775_p11  ;;  %p4490_p5 = por %p4489_p6, %p4488_p1 }
 0x96b   : > { %p4484_p0 = pneg %p4483_p13 }
 0x96d   : > { %p4491_p9 = pnand %p4490_p5, %p4484_p0 }
 0x9d6   : > { %v2478_v40 = vpop.permute.xlu1 %2477  ;;  %v2474_v54 = vpop.permute.xlu0 %2473 }
 0x9d7   : > { %v2480_v55 = vsel %vm2216_vm14, %v2470_v24, %v2474_v54  ;;  %v2820_v24 = vld [vmem:[#allocation14 + $0x70] sm:$0xff] }
 0x9d8   : > { %v2482_v8 = vsel %vm2481_vm6, %v2480_v55, %v2478_v40  ;;  %v4068_v18 = vpack.c.bf16 %v2821_v27, %v2820_v24  ;;  %v2910_v40 = vld [vmem:[%s5683_s13 + $0x70] sm:$0xff]  ;;  %v2911_v54 = vld [vmem:[%s5683_s13 + $0x78] sm:$0xff] }
 0x9d9   : > { %3754 = vmatmul.mubr.msk.f32.vlgmr.msra.gmra.mrb[24].mxu1 %vm2495_vm15, %v2482_v8  ;;  %v4092_v55 = vpack.c.bf16 %v2911_v54, %v2910_v40  ;;  %v2983_v8 = vld [vmem:[%s5685_s15] sm:$0xff] }
 0x9da   : > { %3836 = vmatprep.mubr.msk.f32.mxu1 %vm4585_vm1, %v4578_v28 }
 0xaac   : > { %v2565_v9 = vpop.f32.mrb[24].mxu1 }
 0xaad   : > { %v2574_v16 = vmul.f32 %v3322_v59, %v2565_v9  ;;  %v3755_v13 = vpop.f32.mrb[25].mxu1  ;;  %v2984_v59 = vld [vmem:[%s5685_s15 + $0x8] sm:$0xff] }
 0xaae   : > { %v4095_v9 = vpack.c.bf16 %v2984_v59, %v2983_v8  ;;  %v2987_v13 = vld [vmem:[%s5685_s15 + $0x20] sm:$0xff] }
 0xaaf   : > { %v2580_v39 = vadd.f32 %v3323_v3, %v2574_v16  ;;  %v2986_v3 = vld [vmem:[%s5685_s15 + $0x18] sm:$0xff] }
 0xab1   : > { %v2581_v58 = vmax.f32 %v2580_v39, 0.0  ;;  %v2988_v39 = vld [vmem:[%s5685_s15 + $0x28] sm:$0xff] }
 0xab3   : > { %3757 = vmatpush3.msk.msra.mxu0 %vm1518_vm5, %v2581_v58 }
 0xab4   : > { %3759 = vmatmul.mubr.msk.f32.vlgmr.msra.gmra.mrb[22].mxu0 %vm1473_vm13, %v4964_v29  ;;  %3761 = vmatprep.subr.mxu0 %v4578_v28  ;;  %v2735_v29 = vld [vmem:[#allocation14 + $0x20] sm:$0xff] }
 0xab5   : > { %3762 = vmatpush3.msk.msra.mxu0 %vm1518_vm5, %v2581_v58  ;;  %3763 = vmatprep.mubr.msk.f32.mxu0 %vm4585_vm1, %v4578_v28  ;;  %v4053_v53 = vpack.c.bf16 %v2736_v46, %v2735_v29  ;;  %v4101_v58 = vpack.c.bf16 %v2988_v39, %v2987_v13  ;;  %v2993_v29 = vld [vmem:[%s5685_s15 + $0x50] sm:$0xff]  ;;  %v2994_v46 = vld [vmem:[%s5685_s15 + $0x58] sm:$0xff]  ;;  %vm3070_vm5 = vcmask 73728  }
 0xab6   : > { %4046 = vmatprep.subr.bf16.mxu0 %v4584_v42 }
 0xab8   : > { %3764 = vmatmul.mubr.msk.f32.vlgmr.msra.gmra.mrb[24].mxu0 %vm1473_vm13, %v4967_v30  ;;  %v2896_v30 = vld [vmem:[%s5683_s13] sm:$0xff] }
 0xab9   : > { %4048 = vmatpush3.bf16.msra.mxu0 %v4047_v32  ;;  %3782 = vmatprep.mubr.msk.f32.mxu0 %vm4585_vm1, %v4578_v28  ;;  %v4071_v43 = vpack.c.bf16 %v2897_v37, %v2896_v30  ;;  %v4104_v32 = vpack.c.bf16 %v2990_v15, %v2989_v56  ;;  %v2730_v30 = vld [vmem:[%s5682_s12] sm:$0x1] }
 0xaba   : > { %4049 = vmatprep.subr.bf16.mxu0 %v4584_v42 }
 0xabb   : > { %4072 = vmatpush3.bf16.msra.mxu1 %v4071_v43 }
 0xabc   : > { %4073 = vmatprep.subr.bf16.mxu1 %v4584_v42 }
 0xabd   : > { %4051 = vmatpush3.bf16.msra.mxu0 %v4050_v60  ;;  %v4107_v60 = vpack.c.bf16 %v2992_v10, %v2991_v7 }
 0xabe   : > { %4052 = vmatprep.subr.bf16.mxu0 %v4584_v42 }
 0xabf   : > { %4075 = vmatpush3.bf16.msra.mxu1 %v4074_v45  ;;  %v2998_v45 = vld [vmem:[%s5685_s15 + $0x78] sm:$0xff] }
 0xac0   : > { %4076 = vmatprep.subr.bf16.mxu1 %v4584_v42  ;;  %v4116_v49 = vpack.c.bf16 %v2998_v45, %v2997_v44 }
 0xac1   : > { %4054 = vmatpush3.bf16.msra.mxu0 %v4053_v53  ;;  %v4110_v53 = vpack.c.bf16 %v2994_v46, %v2993_v29 }
 0xac2   : > { %4055 = vmatprep.subr.bf16.mxu0 %v4584_v42 }
 0xac3   : > { %4078 = vmatpush3.bf16.msra.mxu1 %v4077_v51 }
 0xac4   : > { %4079 = vmatprep.subr.bf16.mxu1 %v4584_v42 }
 0xac5   : > { %4057 = vmatpush3.bf16.msra.mxu0 %v4056_v36  ;;  %v4113_v36 = vpack.c.bf16 %v2996_v35, %v2995_v11 }
 0xac6   : > { %4058 = vmatprep.subr.bf16.mxu0 %v4584_v42 }
 0xac7   : > { %4081 = vmatpush3.bf16.msra.mxu1 %v4080_v22 }
 0xac8   : > { %4082 = vmatprep.subr.bf16.mxu1 %v4584_v42 }
 0xacb   : > { %4084 = vmatpush3.bf16.msra.mxu1 %v4083_v41 }
 0xacc   : > { %4085 = vmatprep.subr.bf16.mxu1 %v4584_v42 }
 0xacf   : > { %4087 = vmatpush3.bf16.msra.mxu1 %v4086_v31 }
 0xad0   : > { %4088 = vmatprep.subr.bf16.mxu1 %v4584_v42 }
 0xad3   : > { %4090 = vmatpush3.bf16.msra.mxu1 %v4089_v48 }
 0xad4   : > { %4091 = vmatprep.subr.bf16.mxu1 %v4584_v42 }
 0xad7   : > { %4093 = vmatpush3.bf16.msra.mxu1 %v4092_v55 }
 0xb87   : > { %v2653_v0 = vpop.f32.mrb[22].mxu0 }
 0xb88   : > { %v3760_v23 = vpop.f32.mrb[23].mxu0 }
 0xb8b   : > { %v2725_v12 = vpop.f32.mrb[24].mxu0 }
 0xb8c   : > { %v2729_v2 = vmax.f32 %v2653_v0, %v2725_v12  ;;  %v3765_v26 = vpop.f32.mrb[25].mxu0 }
 0xb8e   : > { %3783 = vmatmul.mubr.msk.f32.vlgmr.msra.gmra.mrb[26].mxu0 %vm2481_vm6, %v2729_v2  ;;  %v2822_v50 = vrot.slane %v2729_v2, 1 }
 0xb8f   : > { %4060 = vmatpush3.bf16.msra.mxu0 %v4059_v61  ;;  %3801 = vmatprep.mubr.msk.f32.mxu0 %vm4585_vm1, %v4578_v28 }
 0xb90   : > { %4061 = vmatprep.subr.bf16.mxu0 %v4584_v42 }
 0xb93   : > { %4063 = vmatpush3.bf16.msra.mxu0 %v4062_v34 }
 0xb94   : > { %4064 = vmatprep.subr.bf16.mxu0 %v4584_v42 }
 0xb97   : > { %4066 = vmatpush3.bf16.msra.mxu0 %v4065_v6 }
 0xb98   : > { %4067 = vmatprep.subr.bf16.mxu0 %v4584_v42 }
 0xb9b   : > { %4069 = vmatpush3.bf16.msra.mxu0 %v4068_v18 }
 0xb9c   : > { %4094 = vmatprep.subr.bf16.mxu0 %v4584_v42 }
 0xb9e   : > { %3802 = vmatmul.mubr.msk.f32.vlgmr.msra.gmra.mrb[26].mxu0 %vm2481_vm6, %v2822_v50 }
 0xb9f   : > { %3871 = vmatprep.mubr.msk.f32.mxu0 %vm4585_vm1, %v4578_v28  ;;  %v2985_v28 = vld [vmem:[%s5685_s15 + $0x10] sm:$0xff]  ;;  %4096 = vmatpush3.bf16.msra.mxu0 %v4095_v9 }
 0xba0   : > { %v4098_v16 = vpack.c.bf16 %v2986_v3, %v2985_v28  ;;  %4097 = vmatprep.subr.bf16.mxu0 %v4584_v42 }
 0xba3   : > { %4099 = vmatpush3.bf16.msra.mxu0 %v4098_v16 }
 0xba4   : > { %4100 = vmatprep.subr.bf16.mxu0 %v4584_v42 }
 0xba7   : > { %4102 = vmatpush3.bf16.msra.mxu0 %v4101_v58 }
 0xba8   : > { %4103 = vmatprep.subr.bf16.mxu0 %v4584_v42 }
 0xbab   : > { %4105 = vmatpush3.bf16.msra.mxu0 %v4104_v32 }
 0xbac   : > { %4106 = vmatprep.subr.bf16.mxu0 %v4584_v42 }
 0xbaf   : > { %4108 = vmatpush3.bf16.msra.mxu0 %v4107_v60 }
 0xbb0   : > { %4109 = vmatprep.subr.bf16.mxu0 %v4584_v42 }
 0xbb3   : > { %4111 = vmatpush3.bf16.msra.mxu0 %v4110_v53 }
 0xbb4   : > { %4112 = vmatprep.subr.bf16.mxu0 %v4584_v42 }
 0xbb7   : > { %4114 = vmatpush3.bf16.msra.mxu0 %v4113_v36 }
 0xbb8   : > { %4115 = vmatprep.subr.bf16.mxu0 %v4584_v42  ;;  %v2912_v42 = vld [vmem:[%s5771_s1] sm:$0x1] }
 0xbbb   : > { %4117 = vmatpush3.bf16.msra.mxu0 %v4116_v49 }
 0xc71   : > { %v2891_v37 = vpop.f32.mrb[26].mxu0 }
 0xc72   : > { %v4118_v38 = vadd.f32 %v2891_v37, %v2730_v30  ;;  %v3803_v43 = vpop.f32.mrb[27].mxu0 }
 0xc74   : > { %3837 = vmatmul.mubr.f32.vlgmr.msra.gmra.mrb[26].mxu1 %v4118_v38 }
 0xd47   : > { %v2979_v57 = vpop.f32.mrb[26].mxu1 }
 0xd48   : > { %v2980_v51 = vadd.f32 %v2979_v57, %v2912_v42  ;;  %v3838_v63 = vpop.f32.mrb[27].mxu1 }
 0xd4a   : > { %3872 = vmatmul.mubr.f32.vlgmr.msra.gmra.mrb[28].mxu0 %v2980_v51 }
 0xe1d   : > { %v3066_v22 = vpop.f32.mrb[28].mxu0 }
 0xe1e   : > { %v3067_v52 = vadd.f32 %v3066_v22, %v2999_v19  ;;  %v3873_v14 = vpop.f32.mrb[29].mxu0 }
 0xe20   : > { %3071 = vst.msk [vmem:[%s651_s24] sm:$0x1] %vm3070_vm5, %v3067_v52 }
 0xe21   : > { %4494 = shalt.err (!%p4491_p9)
}
 0xe22   : > { %s4495_s1 = scalar_lea.hbm %s5628_s30, 16  ;;  %s4499_s2 = scalar_lea.hbm %s5774_s29, 32 }
 0xe23   : > { %p4496_p12 = scmp.ne.s32.totalorder %s5628_s30, %s4495_s1  ;;  %p4500_p3 = scmp.lt.u32.totalorder %s5628_s30, %s5774_s29 }
 0xe24   : > { %p4501_p4 = scmp.lt.u32.totalorder %s4499_s2, %s4495_s1  ;;  %p4503_p8 = scmp.lt.u32.totalorder %s4495_s1, %s5628_s30 }
 0xe25   : > { %p4497_p10 = pnand %p4496_p12, %p5775_p11 }
 0xe26   : > { %p4502_p7 = por %p4501_p4, %p4500_p3 }
 0xe27   : > { %p4498_p2 = pneg %p4497_p10 }
 0xe28   : > { %p4504_p13 = por %p4503_p8, %p4502_p7 }
 0xe2a   : > { %p4505_p0 = pnand %p4504_p13, %p4498_p2 }
 0xe2c   : > { %4508 = shalt.err (!%p4505_p0)
}
 0xe2d   : > { %4153 = dma.vmem_to_hbm [thread:$0]  (%p5775_p11), %s5630_s14, 16, %s5628_s30, %s3073_s16  }
 0xe2e PF: > { %s5776_s24 = sld [smem:[#allocation25_spill]]  ;;  %s5777_s21 = sld [smem:[#allocation23_spill]] }
 0xe2f   : > { %s5778_s18 = sld [smem:[#allocation29_spill]] }
 0xe34   : > { %p4200_p1 = scmp.ge.s32.totalorder %s5776_s24, 2  ;;  %s3097_s23 = sand.u32 1, %s5777_s21  }
 0xe35   : > { %p5779_p6 = scmp.ne.s32.totalorder %s5778_s18, 0  ;;  %s3098_s28 = scalar_lea.sflag [#allocation4], %s3097_s23 }
 0xe37   : > { %p4181_p5 = pnand %p4200_p1, %p5779_p6 }
 0xe39   : > { %4546 = dma.done.wait (!%p4181_p5), %s3098_s28, 16  }
 0xe3a   : > { %4548 = vsyncadd (!%p4181_p5), %s3098_s28, 4294967280  ;;  %s5780_s27 = sld [smem:[#allocation26_spill]]  ;;  %s5781_s22 = sld [smem:[#allocation24_spill]] }
 0xe3b   : > { %s5782_s26 = sld [smem:[#allocation27_spill]]  ;;  %s5783_s24 = smov %s4555_s25 }
 0xe40   : > { %p32_p9 = scmp.ge.s32.totalorder %s5780_s27, 4   ;;  %s5784_s25 = smov %s5781_s22 }
 0xe42   :  { %34 = sbr.rel (!%p32_p9) target bundleno = 16 (0x10), region = 159 }
 0xe49   :  { %3102 = vsyncpa [#allocation3], 1 }
 0xe4a   :  { %3104 = vsyncpa [#allocation3 + $0x1], 1 }
 0xe4b   :  { %3105 = vsyncpa [#allocation6], 1 }
 0xe4c   :  { %3106 = vsyncpa [#allocation9], 1 }
 0xe4d   :  { %3107 = vsyncpa [#allocation12], 1 }
 0xe4e   :  { %3108 = vsyncpa [#allocation15], 1 }
 0xe4f   :  { %3109 = vsyncpa [#allocation4], 1 }
 0xe50   :  { %3111 = vsyncpa [#allocation4 + $0x1], 1 }

</bundles_post_ra>
